<compile_context>
chip_gen: v5e
topology: v5e:2x2
jax: 0.10.0
libtpu: 0.0.40
codegen_flags: <defaults>
</compile_context>

<pallas_src>
import functools
import math

import jax
import jax.numpy as jnp
from jax.experimental import pallas as pl
from jax.experimental.pallas import tpu as pltpu

LN_EPS = 1e-5
BN_EPS = 1e-5


# --------------------------------------------------------------------------- #
# small helpers (run inside kernels)
# --------------------------------------------------------------------------- #
def _mm(a, b):
    # (M, K) @ (K, N) with f32 accumulation on the MXU
    return jax.lax.dot_general(a, b, (((1,), (0,)), ((), ())),
                               preferred_element_type=jnp.float32)


def _bmm(a, b, ca, cb):
    # batched matmul over leading dim 0, contracting a-dim `ca` with b-dim `cb`
    return jax.lax.dot_general(a, b, (((ca,), (cb,)), ((0,), (0,))),
                               preferred_element_type=jnp.float32)


def _layer_norm(x, gamma, beta):
    # x: (M, D) f32 ; gamma/beta: (1, D) f32
    mean = jnp.mean(x, axis=-1, keepdims=True)
    var = jnp.mean(jnp.square(x - mean), axis=-1, keepdims=True)
    return (x - mean) * jax.lax.rsqrt(var + LN_EPS) * gamma + beta


def _split_heads(t, bt, L, n, dh):
    # (bt*L, n*dh) -> (n*bt, L, dh): heads become the leading matmul batch dim so the
    # whole attention runs as two batched dot_generals.  The copies are tile-aligned
    # leading-axis stacks (chosen over lane-splitting reshapes for lowering safety).
    parts = [t[:, i * dh:(i + 1) * dh].reshape(bt, L, dh) for i in range(n)]
    return jnp.stack(parts, axis=0).reshape(n * bt, L, dh)


# --------------------------------------------------------------------------- #
# fused EncoderLayer body (self-attn + residual/LN + 1x1-conv FFN + residual/LN)
# --------------------------------------------------------------------------- #
def _encoder_layer(x_ref, wqkv, bqkv, wo, bo, g1, be1, w1, b1, w2, b2, g2, be2,
                   ctx_scr, attn_ref, n_heads):
    bt, L, D = x_ref.shape
    H = n_heads
    dh = D // H
    scale = 1.0 / math.sqrt(dh)

    xf = x_ref[...].reshape(bt * L, D)                          # (M, D) bf16

    # fused QKV projection: one (M, D)@(D, 3D) matmul; single f32->bf16 down-cast
    qkv = (_mm(xf, wqkv[...]) + bqkv[...]).astype(jnp.bfloat16)  # (M, 3D)
    qh = _split_heads(qkv[:, :D], bt, L, H, dh)                  # (H*bt, L, dh)
    kh = _split_heads(qkv[:, D:2 * D], bt, L, H, dh)
    vh = _split_heads(qkv[:, 2 * D:], bt, L, H, dh)

    # head-batched softmax self-attention (one MXU push stream per matmul)
    s = _bmm(qh, kh, 2, 2) * scale                               # (H*bt, L, L) f32
    s = s - jnp.max(s, axis=-1, keepdims=True)
    e = jnp.exp(s)
    # approx reciprocal: ~2^-12 rel. error, invisible at bf16 activation precision
    a = e * pl.reciprocal(jnp.sum(e, axis=-1, keepdims=True), approx=True)
    if attn_ref is not None:
        ar = a.reshape(H, bt, L, L)                              # leading split only
        for h in range(H):
            attn_ref[:, h, :, :] = ar[h].astype(attn_ref.dtype)  # bf16 writeback

    ctx = _bmm(a.astype(jnp.bfloat16), vh, 2, 1)                 # (H*bt, L, dh) f32
    ctx = ctx.astype(jnp.bfloat16).reshape(H, bt, L, dh)
    for h in range(H):                                           # head-major -> d_model-major
        ctx_scr[:, h * dh:(h + 1) * dh] = ctx[h].reshape(bt * L, dh)
    attn_out = _mm(ctx_scr[...], wo[...]) + bo[...]              # (M, D) f32

    # x = norm1(x + attn(x))           (dropout = identity, eval mode)
    x1 = _layer_norm(xf.astype(jnp.float32) + attn_out, g1[...], be1[...])

    # FFN: conv1(k=1) -> relu -> conv2(k=1); d_ff intermediate kept bf16 into 2nd matmul
    y = _mm(x1.astype(jnp.bfloat16), w1[...]) + b1[...]
    y = jnp.maximum(y, 0.0).astype(jnp.bfloat16)
    y = _mm(y, w2[...]) + b2[...]

    return _layer_norm(x1 + y, g2[...], be2[...])                # (M, D) f32


# --------------------------------------------------------------------------- #
# fused ConvLayer body: Conv1d(k=3, circular pad=1) -> BN(eval) -> ELU -> MaxPool(3,2,1)
# --------------------------------------------------------------------------- #
def _conv_distil(x2, wcp, wcc, wcn, bc, bn_scale, bn_bias, pool_scr, out_ref):
    bt, L, D = x2.shape                                          # x2: f32

    # circular shifts via XLU roll (no concat copies); 3 taps = 3 accumulated matmuls
    xc = x2.astype(jnp.bfloat16).reshape(bt * L, D)
    xp = pltpu.roll(x2, shift=1, axis=1).astype(jnp.bfloat16).reshape(bt * L, D)
    xn = pltpu.roll(x2, shift=L - 1, axis=1).astype(jnp.bfloat16).reshape(bt * L, D)
    h = _mm(xc, wcc[...]) + _mm(xp, wcp[...]) + _mm(xn, wcn[...]) + bc[...]
    h = h * bn_scale[...] + bn_bias[...]                         # folded BatchNorm1d (eval)
    h = jnp.where(h > 0, h, jnp.exp(jnp.minimum(h, 0.0)) - 1.0)  # ELU(1), clamped exp
    h = h.reshape(bt, L, D)

    # MaxPool1d(kernel=3, stride=2, padding=1): window max, then one strided pick.
    neg = jnp.float32(-1e30)
    row = jax.lax.broadcasted_iota(jnp.int32, (bt, L, D), 1)
    h_left = jnp.where(row == 0, neg, pltpu.roll(h, shift=1, axis=1))
    h_right = jnp.where(row == L - 1, neg, pltpu.roll(h, shift=L - 1, axis=1))
    pool_scr[...] = jnp.maximum(jnp.maximum(h, h_left), h_right)
    Lp = out_ref.shape[1]
    out_ref[...] = pool_scr[:, pl.ds(0, Lp, stride=2), :].astype(out_ref.dtype)


# --------------------------------------------------------------------------- #
# kernels
# --------------------------------------------------------------------------- #
def _attn_conv_kernel(x_ref, wqkv, bqkv, wo, bo, g1, be1, w1, b1, w2, b2, g2, be2,
                      wcp, wcc, wcn, bc, bns, bnb, *rest, n_heads, output_attention):
    if output_attention:
        out_ref, attn_ref, ctx_scr, pool_scr = rest
    else:
        out_ref, ctx_scr, pool_scr = rest
        attn_ref = None
    bt, L, D = x_ref.shape
    x2 = _encoder_layer(x_ref, wqkv, bqkv, wo, bo, g1, be1, w1, b1, w2, b2, g2, be2,
                        ctx_scr, attn_ref, n_heads)
    _conv_distil(x2.reshape(bt, L, D), wcp, wcc, wcn, bc, bns, bnb, pool_scr, out_ref)


def _attn_norm_kernel(x_ref, wqkv, bqkv, wo, bo, g1, be1, w1, b1, w2, b2, g2, be2,
                      *rest, n_heads, output_attention, with_norm):
    rest = list(rest)
    if with_norm:
        gn, bn = rest[0], rest[1]
        rest = rest[2:]
    out_ref = rest[0]
    if output_attention:
        attn_ref, ctx_scr = rest[1], rest[2]
    else:
        attn_ref, ctx_scr = None, rest[1]
    bt, L, D = x_ref.shape
    x2 = _encoder_layer(x_ref, wqkv, bqkv, wo, bo, g1, be1, w1, b1, w2, b2, g2, be2,
                        ctx_scr, attn_ref, n_heads)
    if with_norm:
        x2 = _layer_norm(x2, gn[...], bn[...])                   # final Encoder LayerNorm
    out_ref[...] = x2.reshape(bt, L, D).astype(out_ref.dtype)


# --------------------------------------------------------------------------- #
# pallas_call wrappers
# --------------------------------------------------------------------------- #
def _full_spec(p):
    nd = p.ndim
    return pl.BlockSpec(p.shape, lambda b, nd=nd: (0,) * nd)


def _vmem_capacity_bytes():
    try:
        return int(pltpu.get_tpu_info().vmem_capacity_bytes)
    except Exception:
        return 64 * 1024 * 1024      # conservative (v7x-sized) fallback


def _step_vmem_bytes(bt, L, D, d_ff, H, Lp, out_attn, weight_bytes):
    # rough per-grid-step footprint: pipelined blocks (x2 buffers), scratches, f32
    # temporaries, and double-buffered weights
    m = bt * L
    blocks = 2 * (m * D * 2) + 2 * (bt * Lp * D * 2)
    if out_attn:
        blocks += 2 * (bt * H * L * L * 2)
    scratch = m * D * 2 + bt * L * D * 4
    tmp = (m * 3 * D * (4 + 2 + 2)          # qkv f32 + bf16 + head-split copies
           + H * bt * L * L * 4 * 3         # scores / exp / weights (f32)
           + m * D * 4 * 3                  # attn_out / x1 / residual temporaries
           + m * d_ff * (4 + 2)             # FFN intermediate f32 + bf16
           + m * D * (2 * 3 + 4 * 2))       # conv taps (bf16) + conv/pool f32 temps
    return blocks + scratch + 2 * weight_bytes + tmp


def _pick_bt(B, L, D, d_ff, H, Lp, out_attn, weight_bytes):
    budget = int(_vmem_capacity_bytes() * 0.7)
    # keep >= 2 grid steps: shards across the two v7x TensorCores and lets the
    # input/output DMAs pipeline against compute
    max_bt = B if B < 2 else max(1, B // 2)
    bt = 1
    for cand in range(1, max_bt + 1):
        if B % cand == 0 and _step_vmem_bytes(cand, L, D, d_ff, H, Lp, out_attn,
                                              weight_bytes) <= budget:
            bt = cand
    return bt


def _compiler_params():
    cap = _vmem_capacity_bytes()
    return pltpu.CompilerParams(
        dimension_semantics=("parallel",),                       # batch grid axis
        vmem_limit_bytes=min(int(cap * 0.8), 100 * 1024 * 1024))


def attn_conv_forward(x, ap, cp, n_heads, output_attention):
    B, L, D = x.shape
    assert L % 2 == 0, "distil ConvLayer path assumes an even sequence length"
    Lp = (L - 1) // 2 + 1                                        # MaxPool1d(3, 2, pad=1)
    d_ff = ap['w1'].shape[1]
    params = [ap['w_qkv'], ap['b_qkv'], ap['w_out'], ap['b_out'], ap['g1'], ap['be1'],
              ap['w1'], ap['b1'], ap['w2'], ap['b2'], ap['g2'], ap['be2'],
              cp['w_prev'], cp['w_cur'], cp['w_next'], cp['b_conv'],
              cp['bn_scale'], cp['bn_bias']]
    wbytes = sum(int(p.size) * p.dtype.itemsize for p in params)
    bt = _pick_bt(B, L, D, d_ff, n_heads, Lp, output_attention, wbytes)

    out_shapes = [jax.ShapeDtypeStruct((B, Lp, D), x.dtype)]
    out_specs = [pl.BlockSpec((bt, Lp, D), lambda b: (b, 0, 0))]
    if output_attention:
        out_shapes.append(jax.ShapeDtypeStruct((B, n_heads, L, L), jnp.bfloat16))
        out_specs.append(pl.BlockSpec((bt, n_heads, L, L), lambda b: (b, 0, 0, 0)))
    kernel = functools.partial(_attn_conv_kernel, n_heads=n_heads,
                               output_attention=output_attention)
    res = pl.pallas_call(
        kernel,
        out_shape=tuple(out_shapes),
        grid=(B // bt,),
        in_specs=[pl.BlockSpec((bt, L, D), lambda b: (b, 0, 0))]
                 + [_full_spec(p) for p in params],
        out_specs=tuple(out_specs),
        scratch_shapes=[pltpu.VMEM((bt * L, D), jnp.bfloat16),   # ctx merge staging
                        pltpu.VMEM((bt, L, D), jnp.float32)],    # pool staging
        compiler_params=_compiler_params(),
    )(x, *params)
    return (res[0], res[1]) if output_attention else (res[0], None)


def attn_norm_forward(x, ap, norm_p, n_heads, output_attention):
    B, L, D = x.shape
    d_ff = ap['w1'].shape[1]
    params = [ap['w_qkv'], ap['b_qkv'], ap['w_out'], ap['b_out'], ap['g1'], ap['be1'],
              ap['w1'], ap['b1'], ap['w2'], ap['b2'], ap['g2'], ap['be2']]
    with_norm = norm_p is not None
    if with_norm:
        params += [norm_p['g'], norm_p['b']]
    wbytes = sum(int(p.size) * p.dtype.itemsize for p in params)
    bt = _pick_bt(B, L, D, d_ff, n_heads, L, output_attention, wbytes)

    out_shapes = [jax.ShapeDtypeStruct((B, L, D), x.dtype)]
    out_specs = [pl.BlockSpec((bt, L, D), lambda b: (b, 0, 0))]
    if output_attention:
        out_shapes.append(jax.ShapeDtypeStruct((B, n_heads, L, L), jnp.bfloat16))
        out_specs.append(pl.BlockSpec((bt, n_heads, L, L), lambda b: (b, 0, 0, 0)))
    kernel = functools.partial(_attn_norm_kernel, n_heads=n_heads,
                               output_attention=output_attention, with_norm=with_norm)
    res = pl.pallas_call(
        kernel,
        out_shape=tuple(out_shapes),
        grid=(B // bt,),
        in_specs=[pl.BlockSpec((bt, L, D), lambda b: (b, 0, 0))]
                 + [_full_spec(p) for p in params],
        out_specs=tuple(out_specs),
        scratch_shapes=[pltpu.VMEM((bt * L, D), jnp.bfloat16)],  # ctx merge staging
        compiler_params=_compiler_params(),
    )(x, *params)
    return (res[0], res[1]) if output_attention else (res[0], None)


def encoder_forward(x, attn_layer_params, conv_layer_params, norm_params, n_heads,
                    output_attention=True):
    """Mirrors Encoder.forward: zip(attn_layers, conv_layers), last attn layer, norm."""
    attns = []
    if conv_layer_params is not None:
        for ap, cp in zip(attn_layer_params, conv_layer_params):
            x, a = attn_conv_forward(x, ap, cp, n_heads, output_attention)
            attns.append(a)
        x, a = attn_norm_forward(x, attn_layer_params[-1], norm_params, n_heads,
                                 output_attention)
        attns.append(a)
    else:
        n = len(attn_layer_params)
        for i, ap in enumerate(attn_layer_params):
            last = (i == n - 1)
            x, a = attn_norm_forward(x, ap, norm_params if last else None, n_heads,
                                     output_attention)
            attns.append(a)
    return x, attns


# --------------------------------------------------------------------------- #
# deterministic synthetic parameters in the fused compute layout
# --------------------------------------------------------------------------- #
def init_params(key, d_model, n_heads, d_ff, n_attn_layers, n_conv_layers,
                dtype=jnp.bfloat16):
    keys = iter(jax.random.split(key, 256))

    def nrm(shape, scale, dt=dtype):
        return (jax.random.normal(next(keys), shape, jnp.float32) * scale).astype(dt)

    s_d = 1.0 / math.sqrt(d_model)
    attn_layers = []
    for _ in range(n_attn_layers):
        attn_layers.append(dict(
            # [Wq | Wk | Wv] concatenated on the output axis (head h = columns
            # h*dh:(h+1)*dh inside each d_model block) -> single (D, 3D) matmul in-kernel.
            w_qkv=nrm((d_model, 3 * d_model), s_d),
            b_qkv=nrm((1, 3 * d_model), 0.02, jnp.float32),
            # per-head output projections stacked on rows -> one (D, D) matmul
            w_out=nrm((d_model, d_model), s_d),
            b_out=nrm((1, d_model), 0.02, jnp.float32),
            g1=jnp.ones((1, d_model), jnp.float32),
            be1=jnp.zeros((1, d_model), jnp.float32),
            w1=nrm((d_model, d_ff), s_d),
            b1=nrm((1, d_ff), 0.02, jnp.float32),
            w2=nrm((d_ff, d_model), 1.0 / math.sqrt(d_ff)),
            b2=nrm((1, d_model), 0.02, jnp.float32),
            g2=jnp.ones((1, d_model), jnp.float32),
            be2=jnp.zeros((1, d_model), jnp.float32),
        ))

    conv_layers = []
    s_c = 1.0 / math.sqrt(3 * d_model)
    for _ in range(n_conv_layers):
        # Conv1d(k=3) taps [x_{l-1}, x_l, x_{l+1}] stored as three (D, D) matrices.
        bn_gamma = jnp.ones((1, d_model), jnp.float32)
        bn_beta = jnp.zeros((1, d_model), jnp.float32)
        bn_mean = jnp.zeros((1, d_model), jnp.float32)          # running_mean
        bn_var = jnp.ones((1, d_model), jnp.float32)            # running_var
        bn_scale = bn_gamma * jax.lax.rsqrt(bn_var + BN_EPS)
        conv_layers.append(dict(
            w_prev=nrm((d_model, d_model), s_c),
            w_cur=nrm((d_model, d_model), s_c),
            w_next=nrm((d_model, d_model), s_c),
            b_conv=nrm((1, d_model), 0.02, jnp.float32),
            bn_scale=bn_scale,
            bn_bias=bn_beta - bn_mean * bn_scale,
        ))

    norm = dict(g=jnp.ones((1, d_model), jnp.float32),
                b=jnp.zeros((1, d_model), jnp.float32))
    return attn_layers, conv_layers, norm


# --------------------------------------------------------------------------- #
if __name__ == "__main__":
    B, L, D, H, D_FF = 2, 16, 32, 4, 64       # batch, seq, d_model, heads, d_ff
    key = jax.random.PRNGKey(0)
    kx, kp = jax.random.split(key)
    x = jax.random.normal(kx, (B, L, D), jnp.float32).astype(jnp.bfloat16)

    # Standard Informer encoder: 2 attention layers, 1 distil conv layer, final LayerNorm
    attn_params, conv_params, norm_params = init_params(
        kp, d_model=D, n_heads=H, d_ff=D_FF, n_attn_layers=2, n_conv_layers=1)

    out, attns = encoder_forward(x, attn_params, conv_params, norm_params, H,
                                 output_attention=True)
    out = jax.block_until_ready(out)
    for a in attns:
        jax.block_until_ready(a)

    assert out.shape == (B, L // 2, D), out.shape          # seq halved by the distil layer
    assert attns[0].shape == (B, H, L, L)
    assert attns[1].shape == (B, H, L // 2, L // 2)
    assert bool(jnp.all(jnp.isfinite(out.astype(jnp.float32))))

    # perf-mode pass: skip the attention-weight writeback entirely
    out2, attns2 = encoder_forward(x, attn_params, conv_params, norm_params, H,
                                   output_attention=False)
    out2 = jax.block_until_ready(out2)
    assert out2.shape == (B, L // 2, D)
    assert all(a is None for a in attns2)
    assert bool(jnp.all(jnp.isfinite(out2.astype(jnp.float32))))

    # TODO(synk): dropout layers are identity (eval mode); BatchNorm1d folded from running stats.
    print("KERNEL_OK")
</pallas_src>

<mosaic_0001>
module attributes {stable_mosaic.version = 11 : i64} {
  func.func @_attn_conv_kernel(%arg0: i32, %arg1: memref<1x16x32xbf16, #tpu.memory_space<vmem>>, %arg2: memref<32x96xbf16, #tpu.memory_space<vmem>>, %arg3: memref<1x96xf32, #tpu.memory_space<vmem>>, %arg4: memref<32x32xbf16, #tpu.memory_space<vmem>>, %arg5: memref<1x32xf32, #tpu.memory_space<vmem>>, %arg6: memref<1x32xf32, #tpu.memory_space<vmem>>, %arg7: memref<1x32xf32, #tpu.memory_space<vmem>>, %arg8: memref<32x64xbf16, #tpu.memory_space<vmem>>, %arg9: memref<1x64xf32, #tpu.memory_space<vmem>>, %arg10: memref<64x32xbf16, #tpu.memory_space<vmem>>, %arg11: memref<1x32xf32, #tpu.memory_space<vmem>>, %arg12: memref<1x32xf32, #tpu.memory_space<vmem>>, %arg13: memref<1x32xf32, #tpu.memory_space<vmem>>, %arg14: memref<32x32xbf16, #tpu.memory_space<vmem>>, %arg15: memref<32x32xbf16, #tpu.memory_space<vmem>>, %arg16: memref<32x32xbf16, #tpu.memory_space<vmem>>, %arg17: memref<1x32xf32, #tpu.memory_space<vmem>>, %arg18: memref<1x32xf32, #tpu.memory_space<vmem>>, %arg19: memref<1x32xf32, #tpu.memory_space<vmem>>, %arg20: memref<1x8x32xbf16, #tpu.memory_space<vmem>>, %arg21: memref<1x4x16x16xbf16, #tpu.memory_space<vmem>>, %arg22: memref<16x32xbf16, #tpu.memory_space<vmem>>, %arg23: memref<1x16x32xf32, #tpu.memory_space<vmem>>) attributes {dimension_semantics = [#tpu.dimension_semantics<parallel>], iteration_bounds = array<i64: 2>, scalar_prefetch = 0 : i64, scratch_operands = 2 : i64, tpu.core_type = #tpu.core_type<tc>, window_params = [{transform_indices = @transform_0, window_bounds = array<i64: 1, 16, 32>}, {pipeline_mode = #tpu.pipeline_mode<synchronous>, transform_indices = @transform_1, window_bounds = array<i64: 32, 96>}, {pipeline_mode = #tpu.pipeline_mode<synchronous>, transform_indices = @transform_2, window_bounds = array<i64: 1, 96>}, {pipeline_mode = #tpu.pipeline_mode<synchronous>, transform_indices = @transform_3, window_bounds = array<i64: 32, 32>}, {pipeline_mode = #tpu.pipeline_mode<synchronous>, transform_indices = @transform_4, window_bounds = array<i64: 1, 32>}, {pipeline_mode = #tpu.pipeline_mode<synchronous>, transform_indices = @transform_5, window_bounds = array<i64: 1, 32>}, {pipeline_mode = #tpu.pipeline_mode<synchronous>, transform_indices = @transform_6, window_bounds = array<i64: 1, 32>}, {pipeline_mode = #tpu.pipeline_mode<synchronous>, transform_indices = @transform_7, window_bounds = array<i64: 32, 64>}, {pipeline_mode = #tpu.pipeline_mode<synchronous>, transform_indices = @transform_8, window_bounds = array<i64: 1, 64>}, {pipeline_mode = #tpu.pipeline_mode<synchronous>, transform_indices = @transform_9, window_bounds = array<i64: 64, 32>}, {pipeline_mode = #tpu.pipeline_mode<synchronous>, transform_indices = @transform_10, window_bounds = array<i64: 1, 32>}, {pipeline_mode = #tpu.pipeline_mode<synchronous>, transform_indices = @transform_11, window_bounds = array<i64: 1, 32>}, {pipeline_mode = #tpu.pipeline_mode<synchronous>, transform_indices = @transform_12, window_bounds = array<i64: 1, 32>}, {pipeline_mode = #tpu.pipeline_mode<synchronous>, transform_indices = @transform_13, window_bounds = array<i64: 32, 32>}, {pipeline_mode = #tpu.pipeline_mode<synchronous>, transform_indices = @transform_14, window_bounds = array<i64: 32, 32>}, {pipeline_mode = #tpu.pipeline_mode<synchronous>, transform_indices = @transform_15, window_bounds = array<i64: 32, 32>}, {pipeline_mode = #tpu.pipeline_mode<synchronous>, transform_indices = @transform_16, window_bounds = array<i64: 1, 32>}, {pipeline_mode = #tpu.pipeline_mode<synchronous>, transform_indices = @transform_17, window_bounds = array<i64: 1, 32>}, {pipeline_mode = #tpu.pipeline_mode<synchronous>, transform_indices = @transform_18, window_bounds = array<i64: 1, 32>}, {transform_indices = @transform_19, window_bounds = array<i64: 1, 8, 32>}, {transform_indices = @transform_20, window_bounds = array<i64: 1, 4, 16, 16>}]} {
    %c0 = arith.constant 0 : index
    %c0_0 = arith.constant 0 : index
    %c0_1 = arith.constant 0 : index
    %0 = vector.load %arg1[%c0, %c0_0, %c0_1] : memref<1x16x32xbf16, #tpu.memory_space<vmem>>, vector<1x16x32xbf16>
    %1 = vector.shape_cast %0 : vector<1x16x32xbf16> to vector<16x32xbf16>
    %c0_2 = arith.constant 0 : index
    %c0_3 = arith.constant 0 : index
    %2 = vector.load %arg2[%c0_2, %c0_3] : memref<32x96xbf16, #tpu.memory_space<vmem>>, vector<32x96xbf16>
    %cst = arith.constant dense<0.000000e+00> : vector<16x96xf32>
    %3 = tpu.matmul %1, %2, %cst {dimension_numbers = #tpu.dot_dimension_numbers<[1], [0], [0], [1], [0, 0, 1, 1], [], []>} : vector<16x32xbf16>, vector<32x96xbf16>, vector<16x96xf32> -> vector<16x96xf32>
    %c0_4 = arith.constant 0 : index
    %c0_5 = arith.constant 0 : index
    %4 = vector.load %arg3[%c0_4, %c0_5] : memref<1x96xf32, #tpu.memory_space<vmem>>, vector<1x96xf32>
    %5 = vector.broadcast %4 : vector<1x96xf32> to vector<16x96xf32>
    %6 = arith.addf %3, %5 : vector<16x96xf32>
    %7 = arith.truncf %6 : vector<16x96xf32> to vector<16x96xbf16>
    %8 = vector.extract_strided_slice %7 {offsets = [0, 0], sizes = [16, 32], strides = [1, 1]} : vector<16x96xbf16> to vector<16x32xbf16>
    %9 = vector.extract_strided_slice %8 {offsets = [0, 0], sizes = [16, 8], strides = [1, 1]} : vector<16x32xbf16> to vector<16x8xbf16>
    %10 = vector.shape_cast %9 : vector<16x8xbf16> to vector<1x16x8xbf16>
    %11 = vector.extract_strided_slice %8 {offsets = [0, 8], sizes = [16, 8], strides = [1, 1]} : vector<16x32xbf16> to vector<16x8xbf16>
    %12 = vector.shape_cast %11 : vector<16x8xbf16> to vector<1x16x8xbf16>
    %13 = vector.extract_strided_slice %8 {offsets = [0, 16], sizes = [16, 8], strides = [1, 1]} : vector<16x32xbf16> to vector<16x8xbf16>
    %14 = vector.shape_cast %13 : vector<16x8xbf16> to vector<1x16x8xbf16>
    %15 = vector.extract_strided_slice %8 {offsets = [0, 24], sizes = [16, 8], strides = [1, 1]} : vector<16x32xbf16> to vector<16x8xbf16>
    %16 = vector.shape_cast %15 : vector<16x8xbf16> to vector<1x16x8xbf16>
    %17 = vector.shape_cast %10 : vector<1x16x8xbf16> to vector<1x1x16x8xbf16>
    %18 = vector.shape_cast %12 : vector<1x16x8xbf16> to vector<1x1x16x8xbf16>
    %19 = vector.shape_cast %14 : vector<1x16x8xbf16> to vector<1x1x16x8xbf16>
    %20 = vector.shape_cast %16 : vector<1x16x8xbf16> to vector<1x1x16x8xbf16>
    %21 = tpu.concatenate %17, %18, %19, %20 in 0 : vector<1x1x16x8xbf16>, vector<1x1x16x8xbf16>, vector<1x1x16x8xbf16>, vector<1x1x16x8xbf16> -> vector<4x1x16x8xbf16>
    %22 = vector.shape_cast %21 : vector<4x1x16x8xbf16> to vector<4x16x8xbf16>
    %23 = vector.extract_strided_slice %7 {offsets = [0, 32], sizes = [16, 32], strides = [1, 1]} : vector<16x96xbf16> to vector<16x32xbf16>
    %24 = vector.extract_strided_slice %23 {offsets = [0, 0], sizes = [16, 8], strides = [1, 1]} : vector<16x32xbf16> to vector<16x8xbf16>
    %25 = vector.shape_cast %24 : vector<16x8xbf16> to vector<1x16x8xbf16>
    %26 = vector.extract_strided_slice %23 {offsets = [0, 8], sizes = [16, 8], strides = [1, 1]} : vector<16x32xbf16> to vector<16x8xbf16>
    %27 = vector.shape_cast %26 : vector<16x8xbf16> to vector<1x16x8xbf16>
    %28 = vector.extract_strided_slice %23 {offsets = [0, 16], sizes = [16, 8], strides = [1, 1]} : vector<16x32xbf16> to vector<16x8xbf16>
    %29 = vector.shape_cast %28 : vector<16x8xbf16> to vector<1x16x8xbf16>
    %30 = vector.extract_strided_slice %23 {offsets = [0, 24], sizes = [16, 8], strides = [1, 1]} : vector<16x32xbf16> to vector<16x8xbf16>
    %31 = vector.shape_cast %30 : vector<16x8xbf16> to vector<1x16x8xbf16>
    %32 = vector.shape_cast %25 : vector<1x16x8xbf16> to vector<1x1x16x8xbf16>
    %33 = vector.shape_cast %27 : vector<1x16x8xbf16> to vector<1x1x16x8xbf16>
    %34 = vector.shape_cast %29 : vector<1x16x8xbf16> to vector<1x1x16x8xbf16>
    %35 = vector.shape_cast %31 : vector<1x16x8xbf16> to vector<1x1x16x8xbf16>
    %36 = tpu.concatenate %32, %33, %34, %35 in 0 : vector<1x1x16x8xbf16>, vector<1x1x16x8xbf16>, vector<1x1x16x8xbf16>, vector<1x1x16x8xbf16> -> vector<4x1x16x8xbf16>
    %37 = vector.shape_cast %36 : vector<4x1x16x8xbf16> to vector<4x16x8xbf16>
    %38 = vector.extract_strided_slice %7 {offsets = [0, 64], sizes = [16, 32], strides = [1, 1]} : vector<16x96xbf16> to vector<16x32xbf16>
    %39 = vector.extract_strided_slice %38 {offsets = [0, 0], sizes = [16, 8], strides = [1, 1]} : vector<16x32xbf16> to vector<16x8xbf16>
    %40 = vector.shape_cast %39 : vector<16x8xbf16> to vector<1x16x8xbf16>
    %41 = vector.extract_strided_slice %38 {offsets = [0, 8], sizes = [16, 8], strides = [1, 1]} : vector<16x32xbf16> to vector<16x8xbf16>
    %42 = vector.shape_cast %41 : vector<16x8xbf16> to vector<1x16x8xbf16>
    %43 = vector.extract_strided_slice %38 {offsets = [0, 16], sizes = [16, 8], strides = [1, 1]} : vector<16x32xbf16> to vector<16x8xbf16>
    %44 = vector.shape_cast %43 : vector<16x8xbf16> to vector<1x16x8xbf16>
    %45 = vector.extract_strided_slice %38 {offsets = [0, 24], sizes = [16, 8], strides = [1, 1]} : vector<16x32xbf16> to vector<16x8xbf16>
    %46 = vector.shape_cast %45 : vector<16x8xbf16> to vector<1x16x8xbf16>
    %47 = vector.shape_cast %40 : vector<1x16x8xbf16> to vector<1x1x16x8xbf16>
    %48 = vector.shape_cast %42 : vector<1x16x8xbf16> to vector<1x1x16x8xbf16>
    %49 = vector.shape_cast %44 : vector<1x16x8xbf16> to vector<1x1x16x8xbf16>
    %50 = vector.shape_cast %46 : vector<1x16x8xbf16> to vector<1x1x16x8xbf16>
    %51 = tpu.concatenate %47, %48, %49, %50 in 0 : vector<1x1x16x8xbf16>, vector<1x1x16x8xbf16>, vector<1x1x16x8xbf16>, vector<1x1x16x8xbf16> -> vector<4x1x16x8xbf16>
    %52 = vector.shape_cast %51 : vector<4x1x16x8xbf16> to vector<4x16x8xbf16>
    %cst_6 = arith.constant dense<0.000000e+00> : vector<4x16x16xf32>
    %53 = tpu.matmul %22, %37, %cst_6 {dimension_numbers = #tpu.dot_dimension_numbers<[2], [2], [1], [1], [0, 0, 0, 1, 1, 1], [0], [0]>} : vector<4x16x8xbf16>, vector<4x16x8xbf16>, vector<4x16x16xf32> -> vector<4x16x16xf32>
    %cst_7 = arith.constant 0.353553385 : f32
    %54 = vector.broadcast %cst_7 : f32 to vector<4x16x16xf32>
    %55 = arith.mulf %53, %54 : vector<4x16x16xf32>
    %cst_8 = arith.constant dense<0xFF800000> : vector<4x16xf32>
    %56 = vector.multi_reduction <maximumf>, %55, %cst_8 [2] : vector<4x16x16xf32> to vector<4x16xf32>
    %57 = vector.shape_cast %56 : vector<4x16xf32> to vector<4x16x1xf32>
    %58 = vector.broadcast %57 : vector<4x16x1xf32> to vector<4x16x16xf32>
    %59 = arith.subf %55, %58 : vector<4x16x16xf32>
    %60 = math.exp %59 : vector<4x16x16xf32>
    %cst_9 = arith.constant dense<0.000000e+00> : vector<4x16xf32>
    %61 = vector.multi_reduction <add>, %60, %cst_9 [2] : vector<4x16x16xf32> to vector<4x16xf32>
    %62 = vector.shape_cast %61 : vector<4x16xf32> to vector<4x16x1xf32>
    %63 = tpu.reciprocal %62 {approx = true} : vector<4x16x1xf32> -> vector<4x16x1xf32>
    %64 = vector.broadcast %63 : vector<4x16x1xf32> to vector<4x16x16xf32>
    %65 = arith.mulf %60, %64 : vector<4x16x16xf32>
    %66 = vector.shape_cast %65 : vector<4x16x16xf32> to vector<4x1x16x16xf32>
    %67 = vector.extract_strided_slice %66 {offsets = [0, 0, 0, 0], sizes = [1, 1, 16, 16], strides = [1, 1, 1, 1]} : vector<4x1x16x16xf32> to vector<1x1x16x16xf32>
    %68 = vector.shape_cast %67 : vector<1x1x16x16xf32> to vector<1x16x16xf32>
    %69 = arith.truncf %68 : vector<1x16x16xf32> to vector<1x16x16xbf16>
    %c0_10 = arith.constant 0 : index
    %c0_11 = arith.constant 0 : index
    %c0_12 = arith.constant 0 : index
    %c0_13 = arith.constant 0 : index
    %70 = vector.load %arg21[%c0_10, %c0_11, %c0_12, %c0_13] : memref<1x4x16x16xbf16, #tpu.memory_space<vmem>>, vector<1x1x16x16xbf16>
    %71 = vector.shape_cast %70 : vector<1x1x16x16xbf16> to vector<1x16x16xbf16>
    %72 = vector.shape_cast %69 : vector<1x16x16xbf16> to vector<1x1x16x16xbf16>
    tpu.vector_store %arg21[%c0_10, %c0_11, %c0_12, %c0_13], %72 {strides = array<i32>} : memref<1x4x16x16xbf16, #tpu.memory_space<vmem>>, vector<1x1x16x16xbf16>,
    %73 = vector.extract_strided_slice %66 {offsets = [1, 0, 0, 0], sizes = [1, 1, 16, 16], strides = [1, 1, 1, 1]} : vector<4x1x16x16xf32> to vector<1x1x16x16xf32>
    %74 = vector.shape_cast %73 : vector<1x1x16x16xf32> to vector<1x16x16xf32>
    %75 = arith.truncf %74 : vector<1x16x16xf32> to vector<1x16x16xbf16>
    %c0_14 = arith.constant 0 : index
    %c1 = arith.constant 1 : index
    %c0_15 = arith.constant 0 : index
    %c0_16 = arith.constant 0 : index
    %76 = vector.load %arg21[%c0_14, %c1, %c0_15, %c0_16] : memref<1x4x16x16xbf16, #tpu.memory_space<vmem>>, vector<1x1x16x16xbf16>
    %77 = vector.shape_cast %76 : vector<1x1x16x16xbf16> to vector<1x16x16xbf16>
    %78 = vector.shape_cast %75 : vector<1x16x16xbf16> to vector<1x1x16x16xbf16>
    tpu.vector_store %arg21[%c0_14, %c1, %c0_15, %c0_16], %78 {strides = array<i32>} : memref<1x4x16x16xbf16, #tpu.memory_space<vmem>>, vector<1x1x16x16xbf16>,
    %79 = vector.extract_strided_slice %66 {offsets = [2, 0, 0, 0], sizes = [1, 1, 16, 16], strides = [1, 1, 1, 1]} : vector<4x1x16x16xf32> to vector<1x1x16x16xf32>
    %80 = vector.shape_cast %79 : vector<1x1x16x16xf32> to vector<1x16x16xf32>
    %81 = arith.truncf %80 : vector<1x16x16xf32> to vector<1x16x16xbf16>
    %c0_17 = arith.constant 0 : index
    %c2 = arith.constant 2 : index
    %c0_18 = arith.constant 0 : index
    %c0_19 = arith.constant 0 : index
    %82 = vector.load %arg21[%c0_17, %c2, %c0_18, %c0_19] : memref<1x4x16x16xbf16, #tpu.memory_space<vmem>>, vector<1x1x16x16xbf16>
    %83 = vector.shape_cast %82 : vector<1x1x16x16xbf16> to vector<1x16x16xbf16>
    %84 = vector.shape_cast %81 : vector<1x16x16xbf16> to vector<1x1x16x16xbf16>
    tpu.vector_store %arg21[%c0_17, %c2, %c0_18, %c0_19], %84 {strides = array<i32>} : memref<1x4x16x16xbf16, #tpu.memory_space<vmem>>, vector<1x1x16x16xbf16>,
    %85 = vector.extract_strided_slice %66 {offsets = [3, 0, 0, 0], sizes = [1, 1, 16, 16], strides = [1, 1, 1, 1]} : vector<4x1x16x16xf32> to vector<1x1x16x16xf32>
    %86 = vector.shape_cast %85 : vector<1x1x16x16xf32> to vector<1x16x16xf32>
    %87 = arith.truncf %86 : vector<1x16x16xf32> to vector<1x16x16xbf16>
    %c0_20 = arith.constant 0 : index
    %c3 = arith.constant 3 : index
    %c0_21 = arith.constant 0 : index
    %c0_22 = arith.constant 0 : index
    %88 = vector.load %arg21[%c0_20, %c3, %c0_21, %c0_22] : memref<1x4x16x16xbf16, #tpu.memory_space<vmem>>, vector<1x1x16x16xbf16>
    %89 = vector.shape_cast %88 : vector<1x1x16x16xbf16> to vector<1x16x16xbf16>
    %90 = vector.shape_cast %87 : vector<1x16x16xbf16> to vector<1x1x16x16xbf16>
    tpu.vector_store %arg21[%c0_20, %c3, %c0_21, %c0_22], %90 {strides = array<i32>} : memref<1x4x16x16xbf16, #tpu.memory_space<vmem>>, vector<1x1x16x16xbf16>,
    %91 = arith.truncf %65 : vector<4x16x16xf32> to vector<4x16x16xbf16>
    %cst_23 = arith.constant dense<0.000000e+00> : vector<4x16x8xf32>
    %92 = tpu.matmul %91, %52, %cst_23 {dimension_numbers = #tpu.dot_dimension_numbers<[2], [1], [1], [2], [0, 0, 0, 1, 1, 2], [0], [0]>} : vector<4x16x16xbf16>, vector<4x16x8xbf16>, vector<4x16x8xf32> -> vector<4x16x8xf32>
    %93 = arith.truncf %92 : vector<4x16x8xf32> to vector<4x16x8xbf16>
    %94 = vector.shape_cast %93 : vector<4x16x8xbf16> to vector<4x1x16x8xbf16>
    %95 = vector.extract_strided_slice %94 {offsets = [0, 0, 0, 0], sizes = [1, 1, 16, 8], strides = [1, 1, 1, 1]} : vector<4x1x16x8xbf16> to vector<1x1x16x8xbf16>
    %96 = vector.shape_cast %95 : vector<1x1x16x8xbf16> to vector<1x16x8xbf16>
    %97 = vector.shape_cast %96 : vector<1x16x8xbf16> to vector<16x8xbf16>
    %c0_24 = arith.constant 0 : index
    %c0_25 = arith.constant 0 : index
    %98 = vector.load %arg22[%c0_24, %c0_25] : memref<16x32xbf16, #tpu.memory_space<vmem>>, vector<16x8xbf16>
    tpu.vector_store %arg22[%c0_24, %c0_25], %97 {strides = array<i32>} : memref<16x32xbf16, #tpu.memory_space<vmem>>, vector<16x8xbf16>,
    %99 = vector.extract_strided_slice %94 {offsets = [1, 0, 0, 0], sizes = [1, 1, 16, 8], strides = [1, 1, 1, 1]} : vector<4x1x16x8xbf16> to vector<1x1x16x8xbf16>
    %100 = vector.shape_cast %99 : vector<1x1x16x8xbf16> to vector<1x16x8xbf16>
    %101 = vector.shape_cast %100 : vector<1x16x8xbf16> to vector<16x8xbf16>
    %c0_26 = arith.constant 0 : index
    %c8 = arith.constant 8 : index
    %102 = vector.load %arg22[%c0_26, %c8] : memref<16x32xbf16, #tpu.memory_space<vmem>>, vector<16x8xbf16>
    tpu.vector_store %arg22[%c0_26, %c8], %101 {strides = array<i32>} : memref<16x32xbf16, #tpu.memory_space<vmem>>, vector<16x8xbf16>,
    %103 = vector.extract_strided_slice %94 {offsets = [2, 0, 0, 0], sizes = [1, 1, 16, 8], strides = [1, 1, 1, 1]} : vector<4x1x16x8xbf16> to vector<1x1x16x8xbf16>
    %104 = vector.shape_cast %103 : vector<1x1x16x8xbf16> to vector<1x16x8xbf16>
    %105 = vector.shape_cast %104 : vector<1x16x8xbf16> to vector<16x8xbf16>
    %c0_27 = arith.constant 0 : index
    %c16 = arith.constant 16 : index
    %106 = vector.load %arg22[%c0_27, %c16] : memref<16x32xbf16, #tpu.memory_space<vmem>>, vector<16x8xbf16>
    tpu.vector_store %arg22[%c0_27, %c16], %105 {strides = array<i32>} : memref<16x32xbf16, #tpu.memory_space<vmem>>, vector<16x8xbf16>,
    %107 = vector.extract_strided_slice %94 {offsets = [3, 0, 0, 0], sizes = [1, 1, 16, 8], strides = [1, 1, 1, 1]} : vector<4x1x16x8xbf16> to vector<1x1x16x8xbf16>
    %108 = vector.shape_cast %107 : vector<1x1x16x8xbf16> to vector<1x16x8xbf16>
    %109 = vector.shape_cast %108 : vector<1x16x8xbf16> to vector<16x8xbf16>
    %c0_28 = arith.constant 0 : index
    %c24 = arith.constant 24 : index
    %110 = vector.load %arg22[%c0_28, %c24] : memref<16x32xbf16, #tpu.memory_space<vmem>>, vector<16x8xbf16>
    tpu.vector_store %arg22[%c0_28, %c24], %109 {strides = array<i32>} : memref<16x32xbf16, #tpu.memory_space<vmem>>, vector<16x8xbf16>,
    %c0_29 = arith.constant 0 : index
    %c0_30 = arith.constant 0 : index
    %111 = vector.load %arg22[%c0_29, %c0_30] : memref<16x32xbf16, #tpu.memory_space<vmem>>, vector<16x32xbf16>
    %c0_31 = arith.constant 0 : index
    %c0_32 = arith.constant 0 : index
    %112 = vector.load %arg4[%c0_31, %c0_32] : memref<32x32xbf16, #tpu.memory_space<vmem>>, vector<32x32xbf16>
    %cst_33 = arith.constant dense<0.000000e+00> : vector<16x32xf32>
    %113 = tpu.matmul %111, %112, %cst_33 {dimension_numbers = #tpu.dot_dimension_numbers<[1], [0], [0], [1], [0, 0, 1, 1], [], []>} : vector<16x32xbf16>, vector<32x32xbf16>, vector<16x32xf32> -> vector<16x32xf32>
    %c0_34 = arith.constant 0 : index
    %c0_35 = arith.constant 0 : index
    %114 = vector.load %arg5[%c0_34, %c0_35] : memref<1x32xf32, #tpu.memory_space<vmem>>, vector<1x32xf32>
    %115 = vector.broadcast %114 : vector<1x32xf32> to vector<16x32xf32>
    %116 = arith.addf %113, %115 : vector<16x32xf32>
    %117 = arith.extf %1 : vector<16x32xbf16> to vector<16x32xf32>
    %118 = arith.addf %117, %116 : vector<16x32xf32>
    %c0_36 = arith.constant 0 : index
    %c0_37 = arith.constant 0 : index
    %119 = vector.load %arg6[%c0_36, %c0_37] : memref<1x32xf32, #tpu.memory_space<vmem>>, vector<1x32xf32>
    %c0_38 = arith.constant 0 : index
    %c0_39 = arith.constant 0 : index
    %120 = vector.load %arg7[%c0_38, %c0_39] : memref<1x32xf32, #tpu.memory_space<vmem>>, vector<1x32xf32>
    %cst_40 = arith.constant dense<0.000000e+00> : vector<16xf32>
    %121 = vector.multi_reduction <add>, %118, %cst_40 [1] : vector<16x32xf32> to vector<16xf32>
    %122 = vector.shape_cast %121 : vector<16xf32> to vector<16x1xf32>
    %cst_41 = arith.constant 3.200000e+01 : f32
    %123 = vector.broadcast %cst_41 : f32 to vector<16x1xf32>
    %124 = arith.divf %122, %123 : vector<16x1xf32>
    %125 = vector.broadcast %124 : vector<16x1xf32> to vector<16x32xf32>
    %126 = arith.subf %118, %125 : vector<16x32xf32>
    %127 = arith.mulf %126, %126 : vector<16x32xf32>
    %cst_42 = arith.constant dense<0.000000e+00> : vector<16xf32>
    %128 = vector.multi_reduction <add>, %127, %cst_42 [1] : vector<16x32xf32> to vector<16xf32>
    %129 = vector.shape_cast %128 : vector<16xf32> to vector<16x1xf32>
    %cst_43 = arith.constant 3.200000e+01 : f32
    %130 = vector.broadcast %cst_43 : f32 to vector<16x1xf32>
    %131 = arith.divf %129, %130 : vector<16x1xf32>
    %132 = vector.broadcast %124 : vector<16x1xf32> to vector<16x32xf32>
    %133 = arith.subf %118, %132 : vector<16x32xf32>
    %cst_44 = arith.constant 9.99999974E-6 : f32
    %134 = vector.broadcast %cst_44 : f32 to vector<16x1xf32>
    %135 = arith.addf %131, %134 : vector<16x1xf32>
    %136 = math.rsqrt %135 : vector<16x1xf32>
    %137 = vector.broadcast %136 : vector<16x1xf32> to vector<16x32xf32>
    %138 = arith.mulf %133, %137 : vector<16x32xf32>
    %139 = vector.broadcast %119 : vector<1x32xf32> to vector<16x32xf32>
    %140 = arith.mulf %138, %139 : vector<16x32xf32>
    %141 = vector.broadcast %120 : vector<1x32xf32> to vector<16x32xf32>
    %142 = arith.addf %140, %141 : vector<16x32xf32>
    %143 = arith.truncf %142 : vector<16x32xf32> to vector<16x32xbf16>
    %c0_45 = arith.constant 0 : index
    %c0_46 = arith.constant 0 : index
    %144 = vector.load %arg8[%c0_45, %c0_46] : memref<32x64xbf16, #tpu.memory_space<vmem>>, vector<32x64xbf16>
    %cst_47 = arith.constant dense<0.000000e+00> : vector<16x64xf32>
    %145 = tpu.matmul %143, %144, %cst_47 {dimension_numbers = #tpu.dot_dimension_numbers<[1], [0], [0], [1], [0, 0, 1, 1], [], []>} : vector<16x32xbf16>, vector<32x64xbf16>, vector<16x64xf32> -> vector<16x64xf32>
    %c0_48 = arith.constant 0 : index
    %c0_49 = arith.constant 0 : index
    %146 = vector.load %arg9[%c0_48, %c0_49] : memref<1x64xf32, #tpu.memory_space<vmem>>, vector<1x64xf32>
    %147 = vector.broadcast %146 : vector<1x64xf32> to vector<16x64xf32>
    %148 = arith.addf %145, %147 : vector<16x64xf32>
    %cst_50 = arith.constant 0.000000e+00 : f32
    %149 = vector.broadcast %cst_50 : f32 to vector<16x64xf32>
    %150 = arith.maximumf %148, %149 : vector<16x64xf32>
    %151 = arith.truncf %150 : vector<16x64xf32> to vector<16x64xbf16>
    %c0_51 = arith.constant 0 : index
    %c0_52 = arith.constant 0 : index
    %152 = vector.load %arg10[%c0_51, %c0_52] : memref<64x32xbf16, #tpu.memory_space<vmem>>, vector<64x32xbf16>
    %cst_53 = arith.constant dense<0.000000e+00> : vector<16x32xf32>
    %153 = tpu.matmul %151, %152, %cst_53 {dimension_numbers = #tpu.dot_dimension_numbers<[1], [0], [0], [1], [0, 0, 1, 1], [], []>} : vector<16x64xbf16>, vector<64x32xbf16>, vector<16x32xf32> -> vector<16x32xf32>
    %c0_54 = arith.constant 0 : index
    %c0_55 = arith.constant 0 : index
    %154 = vector.load %arg11[%c0_54, %c0_55] : memref<1x32xf32, #tpu.memory_space<vmem>>, vector<1x32xf32>
    %155 = vector.broadcast %154 : vector<1x32xf32> to vector<16x32xf32>
    %156 = arith.addf %153, %155 : vector<16x32xf32>
    %157 = arith.addf %142, %156 : vector<16x32xf32>
    %c0_56 = arith.constant 0 : index
    %c0_57 = arith.constant 0 : index
    %158 = vector.load %arg12[%c0_56, %c0_57] : memref<1x32xf32, #tpu.memory_space<vmem>>, vector<1x32xf32>
    %c0_58 = arith.constant 0 : index
    %c0_59 = arith.constant 0 : index
    %159 = vector.load %arg13[%c0_58, %c0_59] : memref<1x32xf32, #tpu.memory_space<vmem>>, vector<1x32xf32>
    %cst_60 = arith.constant dense<0.000000e+00> : vector<16xf32>
    %160 = vector.multi_reduction <add>, %157, %cst_60 [1] : vector<16x32xf32> to vector<16xf32>
    %161 = vector.shape_cast %160 : vector<16xf32> to vector<16x1xf32>
    %cst_61 = arith.constant 3.200000e+01 : f32
    %162 = vector.broadcast %cst_61 : f32 to vector<16x1xf32>
    %163 = arith.divf %161, %162 : vector<16x1xf32>
    %164 = vector.broadcast %163 : vector<16x1xf32> to vector<16x32xf32>
    %165 = arith.subf %157, %164 : vector<16x32xf32>
    %166 = arith.mulf %165, %165 : vector<16x32xf32>
    %cst_62 = arith.constant dense<0.000000e+00> : vector<16xf32>
    %167 = vector.multi_reduction <add>, %166, %cst_62 [1] : vector<16x32xf32> to vector<16xf32>
    %168 = vector.shape_cast %167 : vector<16xf32> to vector<16x1xf32>
    %cst_63 = arith.constant 3.200000e+01 : f32
    %169 = vector.broadcast %cst_63 : f32 to vector<16x1xf32>
    %170 = arith.divf %168, %169 : vector<16x1xf32>
    %171 = vector.broadcast %163 : vector<16x1xf32> to vector<16x32xf32>
    %172 = arith.subf %157, %171 : vector<16x32xf32>
    %cst_64 = arith.constant 9.99999974E-6 : f32
    %173 = vector.broadcast %cst_64 : f32 to vector<16x1xf32>
    %174 = arith.addf %170, %173 : vector<16x1xf32>
    %175 = math.rsqrt %174 : vector<16x1xf32>
    %176 = vector.broadcast %175 : vector<16x1xf32> to vector<16x32xf32>
    %177 = arith.mulf %172, %176 : vector<16x32xf32>
    %178 = vector.broadcast %158 : vector<1x32xf32> to vector<16x32xf32>
    %179 = arith.mulf %177, %178 : vector<16x32xf32>
    %180 = vector.broadcast %159 : vector<1x32xf32> to vector<16x32xf32>
    %181 = arith.addf %179, %180 : vector<16x32xf32>
    %182 = vector.shape_cast %181 : vector<16x32xf32> to vector<1x16x32xf32>
    %183 = arith.truncf %182 : vector<1x16x32xf32> to vector<1x16x32xbf16>
    %184 = vector.shape_cast %183 : vector<1x16x32xbf16> to vector<16x32xbf16>
    %c1_i32 = arith.constant 1 : i32
    %185 = tpu.dynamic_rotate %182 by %c1_i32 dim 1 : vector<1x16x32xf32>, i32 -> vector<1x16x32xf32>
    %186 = arith.truncf %185 : vector<1x16x32xf32> to vector<1x16x32xbf16>
    %187 = vector.shape_cast %186 : vector<1x16x32xbf16> to vector<16x32xbf16>
    %c15_i32 = arith.constant 15 : i32
    %188 = tpu.dynamic_rotate %182 by %c15_i32 dim 1 : vector<1x16x32xf32>, i32 -> vector<1x16x32xf32>
    %189 = arith.truncf %188 : vector<1x16x32xf32> to vector<1x16x32xbf16>
    %190 = vector.shape_cast %189 : vector<1x16x32xbf16> to vector<16x32xbf16>
    %c0_65 = arith.constant 0 : index
    %c0_66 = arith.constant 0 : index
    %191 = vector.load %arg15[%c0_65, %c0_66] : memref<32x32xbf16, #tpu.memory_space<vmem>>, vector<32x32xbf16>
    %cst_67 = arith.constant dense<0.000000e+00> : vector<16x32xf32>
    %192 = tpu.matmul %184, %191, %cst_67 {dimension_numbers = #tpu.dot_dimension_numbers<[1], [0], [0], [1], [0, 0, 1, 1], [], []>} : vector<16x32xbf16>, vector<32x32xbf16>, vector<16x32xf32> -> vector<16x32xf32>
    %c0_68 = arith.constant 0 : index
    %c0_69 = arith.constant 0 : index
    %193 = vector.load %arg14[%c0_68, %c0_69] : memref<32x32xbf16, #tpu.memory_space<vmem>>, vector<32x32xbf16>
    %cst_70 = arith.constant dense<0.000000e+00> : vector<16x32xf32>
    %194 = tpu.matmul %187, %193, %cst_70 {dimension_numbers = #tpu.dot_dimension_numbers<[1], [0], [0], [1], [0, 0, 1, 1], [], []>} : vector<16x32xbf16>, vector<32x32xbf16>, vector<16x32xf32> -> vector<16x32xf32>
    %195 = arith.addf %192, %194 : vector<16x32xf32>
    %c0_71 = arith.constant 0 : index
    %c0_72 = arith.constant 0 : index
    %196 = vector.load %arg16[%c0_71, %c0_72] : memref<32x32xbf16, #tpu.memory_space<vmem>>, vector<32x32xbf16>
    %cst_73 = arith.constant dense<0.000000e+00> : vector<16x32xf32>
    %197 = tpu.matmul %190, %196, %cst_73 {dimension_numbers = #tpu.dot_dimension_numbers<[1], [0], [0], [1], [0, 0, 1, 1], [], []>} : vector<16x32xbf16>, vector<32x32xbf16>, vector<16x32xf32> -> vector<16x32xf32>
    %198 = arith.addf %195, %197 : vector<16x32xf32>
    %c0_74 = arith.constant 0 : index
    %c0_75 = arith.constant 0 : index
    %199 = vector.load %arg17[%c0_74, %c0_75] : memref<1x32xf32, #tpu.memory_space<vmem>>, vector<1x32xf32>
    %200 = vector.broadcast %199 : vector<1x32xf32> to vector<16x32xf32>
    %201 = arith.addf %198, %200 : vector<16x32xf32>
    %c0_76 = arith.constant 0 : index
    %c0_77 = arith.constant 0 : index
    %202 = vector.load %arg18[%c0_76, %c0_77] : memref<1x32xf32, #tpu.memory_space<vmem>>, vector<1x32xf32>
    %203 = vector.broadcast %202 : vector<1x32xf32> to vector<16x32xf32>
    %204 = arith.mulf %201, %203 : vector<16x32xf32>
    %c0_78 = arith.constant 0 : index
    %c0_79 = arith.constant 0 : index
    %205 = vector.load %arg19[%c0_78, %c0_79] : memref<1x32xf32, #tpu.memory_space<vmem>>, vector<1x32xf32>
    %206 = vector.broadcast %205 : vector<1x32xf32> to vector<16x32xf32>
    %207 = arith.addf %204, %206 : vector<16x32xf32>
    %cst_80 = arith.constant 0.000000e+00 : f32
    %208 = vector.broadcast %cst_80 : f32 to vector<16x32xf32>
    %209 = arith.cmpf ogt, %207, %208 : vector<16x32xf32>
    %cst_81 = arith.constant 0.000000e+00 : f32
    %210 = vector.broadcast %cst_81 : f32 to vector<16x32xf32>
    %211 = arith.minimumf %207, %210 : vector<16x32xf32>
    %212 = math.exp %211 : vector<16x32xf32>
    %cst_82 = arith.constant 1.000000e+00 : f32
    %213 = vector.broadcast %cst_82 : f32 to vector<16x32xf32>
    %214 = arith.subf %212, %213 : vector<16x32xf32>
    %215 = arith.select %209, %207, %214 : vector<16x32xi1>, vector<16x32xf32>
    %216 = vector.shape_cast %215 : vector<16x32xf32> to vector<1x16x32xf32>
    %217 = tpu.iota {dimensions = array<i32: 1>} : vector<1x16x32xi32>
    %c0_i32 = arith.constant 0 : i32
    %218 = vector.broadcast %c0_i32 : i32 to vector<1x16x32xi32>
    %219 = arith.cmpi eq, %217, %218 : vector<1x16x32xi32>
    %c1_i32_83 = arith.constant 1 : i32
    %220 = tpu.dynamic_rotate %216 by %c1_i32_83 dim 1 : vector<1x16x32xf32>, i32 -> vector<1x16x32xf32>
    %cst_84 = arith.constant -1.000000e+30 : f32
    %221 = vector.broadcast %cst_84 : f32 to vector<1x16x32xf32>
    %222 = arith.select %219, %221, %220 : vector<1x16x32xi1>, vector<1x16x32xf32>
    %c15_i32_85 = arith.constant 15 : i32
    %223 = vector.broadcast %c15_i32_85 : i32 to vector<1x16x32xi32>
    %224 = arith.cmpi eq, %217, %223 : vector<1x16x32xi32>
    %c15_i32_86 = arith.constant 15 : i32
    %225 = tpu.dynamic_rotate %216 by %c15_i32_86 dim 1 : vector<1x16x32xf32>, i32 -> vector<1x16x32xf32>
    %cst_87 = arith.constant -1.000000e+30 : f32
    %226 = vector.broadcast %cst_87 : f32 to vector<1x16x32xf32>
    %227 = arith.select %224, %226, %225 : vector<1x16x32xi1>, vector<1x16x32xf32>
    %228 = arith.maximumf %216, %222 : vector<1x16x32xf32>
    %229 = arith.maximumf %228, %227 : vector<1x16x32xf32>
    %c0_88 = arith.constant 0 : index
    %c0_89 = arith.constant 0 : index
    %c0_90 = arith.constant 0 : index
    %230 = vector.load %arg23[%c0_88, %c0_89, %c0_90] : memref<1x16x32xf32, #tpu.memory_space<vmem>>, vector<1x16x32xf32>
    tpu.vector_store %arg23[%c0_88, %c0_89, %c0_90], %229 {strides = array<i32>} : memref<1x16x32xf32, #tpu.memory_space<vmem>>, vector<1x16x32xf32>,
    %c0_91 = arith.constant 0 : index
    %c0_92 = arith.constant 0 : index
    %c0_93 = arith.constant 0 : index
    %231 = tpu.strided_load %arg23[%c0_91, %c0_92, %c0_93] {strides = array<i32: 1, 2, 1>} : memref<1x16x32xf32, #tpu.memory_space<vmem>>, vector<1x8x32xf32>
    %232 = arith.truncf %231 : vector<1x8x32xf32> to vector<1x8x32xbf16>
    %c0_94 = arith.constant 0 : index
    %c0_95 = arith.constant 0 : index
    %c0_96 = arith.constant 0 : index
    %233 = vector.load %arg20[%c0_94, %c0_95, %c0_96] : memref<1x8x32xbf16, #tpu.memory_space<vmem>>, vector<1x8x32xbf16>
    tpu.vector_store %arg20[%c0_94, %c0_95, %c0_96], %232 {strides = array<i32>} : memref<1x8x32xbf16, #tpu.memory_space<vmem>>, vector<1x8x32xbf16>,
    return
  }
  func.func @transform_0(%arg0: i32) -> (i32, i32, i32) {
    %c0_i32 = arith.constant 0 : i32
    %c0_i32_0 = arith.constant 0 : i32
    %c0_i32_1 = arith.constant 0 : i32
    return %arg0, %c0_i32, %c0_i32_0 : i32, i32, i32
  }
  func.func @transform_1(%arg0: i32) -> (i32, i32) {
    %c0_i32 = arith.constant 0 : i32
    %c0_i32_0 = arith.constant 0 : i32
    %c0_i32_1 = arith.constant 0 : i32
    return %c0_i32, %c0_i32_0 : i32, i32
  }
  func.func @transform_2(%arg0: i32) -> (i32, i32) {
    %c0_i32 = arith.constant 0 : i32
    %c0_i32_0 = arith.constant 0 : i32
    %c0_i32_1 = arith.constant 0 : i32
    return %c0_i32, %c0_i32_0 : i32, i32
  }
  func.func @transform_3(%arg0: i32) -> (i32, i32) {
    %c0_i32 = arith.constant 0 : i32
    %c0_i32_0 = arith.constant 0 : i32
    %c0_i32_1 = arith.constant 0 : i32
    return %c0_i32, %c0_i32_0 : i32, i32
  }
  func.func @transform_4(%arg0: i32) -> (i32, i32) {
    %c0_i32 = arith.constant 0 : i32
    %c0_i32_0 = arith.constant 0 : i32
    %c0_i32_1 = arith.constant 0 : i32
    return %c0_i32, %c0_i32_0 : i32, i32
  }
  func.func @transform_5(%arg0: i32) -> (i32, i32) {
    %c0_i32 = arith.constant 0 : i32
    %c0_i32_0 = arith.constant 0 : i32
    %c0_i32_1 = arith.constant 0 : i32
    return %c0_i32, %c0_i32_0 : i32, i32
  }
  func.func @transform_6(%arg0: i32) -> (i32, i32) {
    %c0_i32 = arith.constant 0 : i32
    %c0_i32_0 = arith.constant 0 : i32
    %c0_i32_1 = arith.constant 0 : i32
    return %c0_i32, %c0_i32_0 : i32, i32
  }
  func.func @transform_7(%arg0: i32) -> (i32, i32) {
    %c0_i32 = arith.constant 0 : i32
    %c0_i32_0 = arith.constant 0 : i32
    %c0_i32_1 = arith.constant 0 : i32
    return %c0_i32, %c0_i32_0 : i32, i32
  }
  func.func @transform_8(%arg0: i32) -> (i32, i32) {
    %c0_i32 = arith.constant 0 : i32
    %c0_i32_0 = arith.constant 0 : i32
    %c0_i32_1 = arith.constant 0 : i32
    return %c0_i32, %c0_i32_0 : i32, i32
  }
  func.func @transform_9(%arg0: i32) -> (i32, i32) {
    %c0_i32 = arith.constant 0 : i32
    %c0_i32_0 = arith.constant 0 : i32
    %c0_i32_1 = arith.constant 0 : i32
    return %c0_i32, %c0_i32_0 : i32, i32
  }
  func.func @transform_10(%arg0: i32) -> (i32, i32) {
    %c0_i32 = arith.constant 0 : i32
    %c0_i32_0 = arith.constant 0 : i32
    %c0_i32_1 = arith.constant 0 : i32
    return %c0_i32, %c0_i32_0 : i32, i32
  }
  func.func @transform_11(%arg0: i32) -> (i32, i32) {
    %c0_i32 = arith.constant 0 : i32
    %c0_i32_0 = arith.constant 0 : i32
    %c0_i32_1 = arith.constant 0 : i32
    return %c0_i32, %c0_i32_0 : i32, i32
  }
  func.func @transform_12(%arg0: i32) -> (i32, i32) {
    %c0_i32 = arith.constant 0 : i32
    %c0_i32_0 = arith.constant 0 : i32
    %c0_i32_1 = arith.constant 0 : i32
    return %c0_i32, %c0_i32_0 : i32, i32
  }
  func.func @transform_13(%arg0: i32) -> (i32, i32) {
    %c0_i32 = arith.constant 0 : i32
    %c0_i32_0 = arith.constant 0 : i32
    %c0_i32_1 = arith.constant 0 : i32
    return %c0_i32, %c0_i32_0 : i32, i32
  }
  func.func @transform_14(%arg0: i32) -> (i32, i32) {
    %c0_i32 = arith.constant 0 : i32
    %c0_i32_0 = arith.constant 0 : i32
    %c0_i32_1 = arith.constant 0 : i32
    return %c0_i32, %c0_i32_0 : i32, i32
  }
  func.func @transform_15(%arg0: i32) -> (i32, i32) {
    %c0_i32 = arith.constant 0 : i32
    %c0_i32_0 = arith.constant 0 : i32
    %c0_i32_1 = arith.constant 0 : i32
    return %c0_i32, %c0_i32_0 : i32, i32
  }
  func.func @transform_16(%arg0: i32) -> (i32, i32) {
    %c0_i32 = arith.constant 0 : i32
    %c0_i32_0 = arith.constant 0 : i32
    %c0_i32_1 = arith.constant 0 : i32
    return %c0_i32, %c0_i32_0 : i32, i32
  }
  func.func @transform_17(%arg0: i32) -> (i32, i32) {
    %c0_i32 = arith.constant 0 : i32
    %c0_i32_0 = arith.constant 0 : i32
    %c0_i32_1 = arith.constant 0 : i32
    return %c0_i32, %c0_i32_0 : i32, i32
  }
  func.func @transform_18(%arg0: i32) -> (i32, i32) {
    %c0_i32 = arith.constant 0 : i32
    %c0_i32_0 = arith.constant 0 : i32
    %c0_i32_1 = arith.constant 0 : i32
    return %c0_i32, %c0_i32_0 : i32, i32
  }
  func.func @transform_19(%arg0: i32) -> (i32, i32, i32) {
    %c0_i32 = arith.constant 0 : i32
    %c0_i32_0 = arith.constant 0 : i32
    %c0_i32_1 = arith.constant 0 : i32
    return %arg0, %c0_i32, %c0_i32_0 : i32, i32, i32
  }
  func.func @transform_20(%arg0: i32) -> (i32, i32, i32, i32) {
    %c0_i32 = arith.constant 0 : i32
    %c0_i32_0 = arith.constant 0 : i32
    %c0_i32_1 = arith.constant 0 : i32
    %c0_i32_2 = arith.constant 0 : i32
    return %arg0, %c0_i32, %c0_i32_0, %c0_i32_1 : i32, i32, i32, i32
  }
}

</mosaic_0001>

<bundles_post_ra>
// kernel: tpu_custom_call.1
= control target key start
LH: loop header
LB: loop body
LE: loop exit
PB: predicated region body
PF: predicated region fallthrough
CT: control target
= control target key end

     0   :  { %s2747_s0 = inlined_call_operand.vmem [shape: bf16[2,16,32], index: 0, kind: input, shape index: {}]   ;;  %s2748_s1 = inlined_call_operand.vmem [shape: bf16[32,96], index: 1, kind: input, shape index: {}]   ;;  %s2749_s2 = inlined_call_operand.vmem [shape: f32[1,96], index: 2, kind: input, shape index: {}]   ;;  %s2750_s3 = inlined_call_operand.vmem [shape: bf16[32,32], index: 3, kind: input, shape index: {}]   ;;  %s2751_s4 = inlined_call_operand.vmem [shape: f32[1,32], index: 4, kind: input, shape index: {}]   ;;  %s2752_s5 = inlined_call_operand.vmem [shape: f32[1,32], index: 5, kind: input, shape index: {}]   ;;  %s2753_s6 = inlined_call_operand.vmem [shape: f32[1,32], index: 6, kind: input, shape index: {}]   ;;  %s2754_s7 = inlined_call_operand.hbm [shape: bf16[32,64], index: 7, kind: input, shape index: {}]   ;;  %s2755_s8 = inlined_call_operand.vmem [shape: f32[1,64], index: 8, kind: input, shape index: {}]   ;;  %s2756_s9 = inlined_call_operand.vmem [shape: bf16[64,32], index: 9, kind: input, shape index: {}]   ;;  %s2757_s10 = inlined_call_operand.vmem [shape: f32[1,32], index: 10, kind: input, shape index: {}]   ;;  %s2758_s11 = inlined_call_operand.vmem [shape: f32[1,32], index: 11, kind: input, shape index: {}]   ;;  %s2759_s12 = inlined_call_operand.vmem [shape: f32[1,32], index: 12, kind: input, shape index: {}]   ;;  %s2760_s13 = inlined_call_operand.hbm [shape: bf16[32,32], index: 13, kind: input, shape index: {}]   ;;  %s2761_s14 = inlined_call_operand.hbm [shape: bf16[32,32], index: 14, kind: input, shape index: {}]   ;;  %s2762_s15 = inlined_call_operand.hbm [shape: bf16[32,32], index: 15, kind: input, shape index: {}]   ;;  %s2763_s16 = inlined_call_operand.vmem [shape: f32[1,32], index: 16, kind: input, shape index: {}]   ;;  %s2764_s17 = inlined_call_operand.vmem [shape: f32[1,32], index: 17, kind: input, shape index: {}]   ;;  %s2765_s18 = inlined_call_operand.vmem [shape: f32[1,32], index: 18, kind: input, shape index: {}]   ;;  %s2766_s19 = inlined_call_operand.hbm [shape: bf16[2,8,32], index: 19, kind: output, shape index: {0}]   ;;  %s2767_s20 = inlined_call_operand.hbm [shape: bf16[2,4,16,16], index: 20, kind: output, shape index: {1}]  }
   0x1   :  { %2778 = sst [smem:[#allocation26_spill]] %s2747_s0 }
   0x2   :  { %2779 = sst [smem:[#allocation27_spill]] %s2748_s1 }
   0x3   :  { %2780 = sst [smem:[#allocation28_spill]] %s2749_s2 }
   0x4   :  { %2781 = sst [smem:[#allocation29_spill]] %s2750_s3 }
   0x5   :  { %2782 = sst [smem:[#allocation30_spill]] %s2751_s4 }
   0x6   :  { %2783 = sst [smem:[#allocation31_spill]] %s2752_s5 }
   0x7   :  { %2784 = sst [smem:[#allocation32_spill]] %s2754_s7 }
   0x8   :  { %2785 = sst [smem:[#allocation33_spill]] %s2760_s13 }
   0x9   :  { %2786 = sst [smem:[#allocation34_spill]] %s2764_s17 }
   0xa   :  { %2787 = sst [smem:[#allocation35_spill]] %s2765_s18 }
   0xb   :  { %2788 = sst [smem:[#allocation36_spill]] %s2766_s19 }
   0xc   :  { %26 = vsyncpa [#allocation5], 0 }
   0xd   :  { %27 = vsyncpa [#allocation8], 0 }
   0xe   :  { %28 = vsyncpa [#allocation11], 0 }
   0xf   :  { %29 = vsyncpa [#allocation6], 0 }
  0x10   :  { %31 = vsyncpa [#allocation6 + $0x1], 0 }
  0x11   :  { %32 = vsyncpa [#allocation14], 0 }
  0x12   :  { %34 = vsyncpa [#allocation14 + $0x1], 0  ;;  %s2397_s1 = smov 0   ;;  %s2399_s22 = smov 0  }
  0x13   :  { %s2401_s23 = smov 0   ;;  %s2403_s24 = smov 0  }
  0x14 LB: > { %2789 = sst [smem:[#allocation20_spill]] %s2262_s1  ;;  %s2418_s2 = sadd.s32 4294967295, %s2274_s24   ;;  %s2274_s24 = sphi %s2403_s24, %s2815_s24   ;;  %s2270_s23 = sphi %s2401_s23, %s2817_s23   ;;  %s2266_s22 = sphi %s2399_s22, %s2819_s22   ;;  %s2262_s1 = sphi %s2397_s1, %s2818_s1  }
  0x15   : > { %2790 = sst [smem:[#allocation21_spill]] %s2270_s23  ;;  %s1756_s25 = sadd.s32 4294967294, %s2274_s24  }
  0x16   : > { %2791 = sst [smem:[#allocation22_spill]] %s2274_s24  ;;  %s2422_s3 = sadd.s32 1, %s2274_s24  }
  0x17   : > { %2792 = sst [smem:[#allocation23_spill]] %s2422_s3  ;;  %s451_s26 = sadd.s32 1, %s2270_s23 }
  0x18   : > { %s448_s27 = ssub.s32 %s2274_s24, %s2422_s3  ;;  %p461_p0 = scmp.ne.s32.totalorder %s2270_s23, %s2266_s22 }
  0x19   : > { %p449_p1 = scmp.eq.s32.totalorder %s448_s27, 0  ;;  %p462_p2 = scmp.eq.s32.totalorder %s2418_s2, 1 }
  0x1a   : > { %p467_p3 = scmp.ne.s32.totalorder %s2266_s22, %s2262_s1  ;;  %p468_p4 = scmp.eq.s32.totalorder %s1756_s25, 1 }
  0x1b   : > { %s2433_s28 = scalar_select %p449_p1, %s2270_s23, %s451_s26  }
  0x1c   : > { %p2435_p5 = por %p462_p2, %p461_p0  ;;  %p2439_p6 = por %p468_p4, %p467_p3 }
  0x1d   : > { %2793 = sst [smem:[#allocation24_spill]] %s2433_s28  ;;  %p1757_p7 = scmp.ge.s32.totalorder %s2274_s24, 1 }
  0x1e   : > { %s2795_s29 = scalar_select %p2439_p6, 1, 0 }
  0x1f   : > { %p501_p8 = scmp.lt.s32.totalorder %s2274_s24, 3  ;;  %p1934_p9 = scmp.eq.s32.totalorder %s2418_s2, 0 }
  0x20   : > { %2796 = sst [smem:[#allocation25_spill]] %s2795_s29  ;;  %s2276_s3 = smov [#allocation7]  }
  0x21   : > { %p2446_p10 = pnand %p1757_p7, %p501_p8  ;;  %s2798_s13 = sld [smem:[#allocation33_spill]] }
  0x22   : > { %s2799_s7 = sld [smem:[#allocation32_spill]]  ;;  %s561_s29 = sshll.u32 %s2276_s3, 4  ;;  %s562_s29 = int_to_ptr.vmem [resolvable:$true] %s561_s29 }
  0x23   : > { %p1914_p11 = pneg %p2446_p10  ;;  %s2277_s0 = smov 64  }
  0x24   : > { %s2278_s21 = smov 4   ;;  %s573_s1 = sshll.u32 %s2761_s14, 4  ;;  %s574_s1 = int_to_ptr.hbm [resolvable:$true] %s573_s1 }
  0x25   : > { %p2460_p12 = pnand %p1934_p9, %p1914_p11  ;;  %s587_s19 = sshll.u32 %s2762_s15, 4  ;;  %s588_s19 = int_to_ptr.hbm [resolvable:$true] %s587_s19 }
  0x26   : > { %s2280_s18 = smov [#allocation9]  }
  0x27   : > { %s559_s25 = sshll.u32 %s2798_s13, 4  ;;  %s2279_s13 = smov [#allocation4]   ;;  %s560_s25 = int_to_ptr.hbm [resolvable:$true] %s559_s25 }
  0x28   : > { %s530_s28 = sshll.u32 %s2799_s7, 4  ;;  %s532_s26 = sshll.u32 %s2279_s13, 4  ;;  %s531_s28 = int_to_ptr.hbm [resolvable:$true] %s530_s28  ;;  %s533_s26 = int_to_ptr.vmem [resolvable:$true] %s532_s26 }
  0x29   : > { %1920 = dma.hbm_to_vmem [thread:$0]  (!%p2460_p12), %s560_s25, 256, %s562_s29, [#allocation8], %s2277_s0, %s2277_s0, %s2278_s21  }
  0x2a   : > { %1917 = dma.hbm_to_vmem [thread:$0]  (!%p2460_p12), %s531_s28, 256, %s533_s26, [#allocation5], %s2277_s0, %s2277_s0, %s2278_s21  }
  0x2b   : > { %s575_s17 = sshll.u32 %s2280_s18, 4  ;;  %s2281_s29 = smov [#allocation10]   ;;  %s576_s17 = int_to_ptr.vmem [resolvable:$true] %s575_s17 }
  0x2c   : > { %1923 = dma.hbm_to_vmem [thread:$0]  (!%p2460_p12), %s574_s1, 256, %s576_s17, [#allocation8], %s2277_s0, %s2277_s0, %s2278_s21  }
  0x2d   : > { %s589_s13 = sshll.u32 %s2281_s29, 4  ;;  %622 = sbr.rel (%p2446_p10) target bundleno = 2302 (0x8fe), region = 96  ;;  %s590_s13 = int_to_ptr.vmem [resolvable:$true] %s589_s13 }
  0x2e   : > { %1926 = dma.hbm_to_vmem [thread:$0]  (!%p2460_p12), %s588_s19, 256, %s590_s13, [#allocation11], %s2277_s0, %s2277_s0, %s2278_s21  }
  0x32   : > { %2241 = dma.done.wait (%p1934_p9), [#allocation5], 256  }
  0x33   : > { %2243 = vsyncadd (%p1934_p9), [#allocation5], 4294967040 }
  0x34   : > { %2245 = dma.done.wait (%p1934_p9), [#allocation8], 512  }
  0x35   : > { %2247 = vsyncadd (%p1934_p9), [#allocation8], 4294966784 }
  0x36   : > { %2249 = dma.done.wait (%p1934_p9), [#allocation11], 256  }
  0x37   : > { %2251 = vsyncadd (%p1934_p9), [#allocation11], 4294967040  ;;  %p701_p13 = scmp.lt.s32.totalorder %s2418_s2, 1  ;;  %s2801_s1 = sld [smem:[#allocation27_spill]]  ;;  %vm734_vm0 = vcmask 261120   ;;  %vm773_vm1 = vcmask 64512  }
  0x38   : > { %s2803_s0 = sld [smem:[#allocation26_spill]]  ;;  %s2282_s29 = smov 104   ;;  %vm877_vm2 = vcmask 130048   ;;  %vm968_vm3 = vcmask 125952   ;;  %vm1094_vm4 = vcmask 60416   ;;  %vm1105_vm5 = vcmask 126016  }
  0x39   : > { %s702_s7 = scalar_select %p701_p13, %s2418_s2, 1  ;;  %vm1116_vm6 = vcmask 191616   ;;  %vm1127_vm7 = vcmask 257216   ;;  %vm1318_vm15 = vcmask 523264  }
  0x3a   : > { %s2804_s3 = sld [smem:[#allocation28_spill]]  ;;  %s2283_s13 = smov 112  }
  0x3b   : > { %s1874_s17 = sshll.u32 %s702_s7, 3  ;;  %s2284_s7 = smov 120  }
  0x3c   : > { %s2777_s18 = smov 64   ;;  %s2572_s19 = sand.u32 1, %s2266_s22  }
  0x3d   : > { %s2802_s28 = smov %s2801_s1  ;;  %v1877_v0 = vld [vmem:[%s2801_s1 + $0x8] sm:$0xff]  ;;  %s1769_s1 = sshll.u32 %s2572_s19, 5 }
  0x3e   : > { %v1876_v1 = vld [vmem:[%s2802_s28] sm:$0xff]  ;;  %744 = vmatpush.bf16.msra.mxu0 %v1877_v0  ;;  %s2503_s21 = scalar_lea.vmem %s2803_s0, %s1874_s17  ;;  %s2285_s17 = smov 96  }
  0x3f   : > { %v1875_v2 = vld [vmem:[%s2503_s21] sm:$0xff]  ;;  %s2575_s23 = scalar_lea.vmem [#allocation13], %s1769_s1  ;;  %s2287_s24 = smov 8  }
  0x40   : > { %v1991_v3 = vld [vmem:[%s2804_s3] ss:$0 sm:$0xff]  ;;  %s2288_s30 = smov 16   ;;  %s2289_s25 = smov 24  }
  0x41   : > { %s2805_s27 = sld [smem:[#allocation29_spill]]  ;;  %s2188_s3 = scalar_lea.hbm %s2767_s20, 64 }
  0x42   : > { %745 = vmatpush.bf16.msra.mxu0 %v1876_v1  ;;  %s2807_s5 = sld [smem:[#allocation31_spill]] }
  0x45   : > { %1784 = vmatmul.msk.bf16.vlgmr.msra.gmra.mxu0 %vm734_vm0, %v1875_v2 }
  0xc2   : > { %v747_v4 = vpop.f32.mrf.mxu0 }
  0xc3   : > { %v748_v5 = vadd.f32 %v1991_v3, %v747_v4 }
  0xc5   : > { %v752_v6 = vpack.c.bf16 %v748_v5, %v748_v5 }
  0xc7   : > { %764 = vrot.lane.b32.xlu2 %v752_v6, %s2282_s29  ;;  %760 = vrot.lane.b32.xlu1 %v752_v6, %s2283_s13  ;;  %v768_v10 = vunpack.c.l.b16 %v752_v6 }
  0xc8   : > { %756 = vrot.lane.b32.xlu0 %v752_v6, %s2284_s7 }
  0xca   : > { %v749_v7 = vpop.f32.mrf.mxu0 }
  0xcb   : > { %v750_v8 = vadd.f32 %v1991_v3, %v749_v7 }
  0xcd   : > { %v753_v9 = vpack.c.bf16 %v750_v8, %v750_v8 }
  0xcf   : > { %766 = vrot.lane.b32.xlu2 %v753_v9, %s2282_s29  ;;  %762 = vrot.lane.b32.xlu1 %v753_v9, %s2283_s13  ;;  %v769_v11 = vunpack.c.l.b16 %v753_v9  ;;  %s1893_s29 = sshll.u32 %s2418_s2, 5 }
  0xd0   : > { %758 = vrot.lane.b32.xlu0 %v753_v9, %s2284_s7 }
  0xd1   : > { %v2510_v12 = vpack.c.b16 %v769_v11, %v768_v10 }
 0x121   : > { %v765_v13 = vpop.permute.xlu2 %764 }
 0x122   : > { %v844_v15 = vunpack.c.l.b16 %v765_v13 }
 0x129   : > { %v767_v14 = vpop.permute.xlu2 %766 }
 0x12a   : > { %v845_v16 = vunpack.c.l.b16 %v767_v14 }
 0x12c   : > { %v2512_v17 = vpack.c.b16 %v845_v16, %v844_v15 }
 0x12e   : > { %847 = vrot.lane.b32.xlu2 %v2512_v17, %s2285_s17 }
 0x139   : > { %v761_v18 = vpop.permute.xlu1 %760 }
 0x13a   : > { %v757_v19 = vpop.permute.xlu0 %756  ;;  %v819_v21 = vunpack.c.l.b16 %v761_v18 }
 0x13b   : > { %v794_v24 = vunpack.c.l.b16 %v757_v19 }
 0x141   : > { %v763_v20 = vpop.permute.xlu1 %762 }
 0x142   : > { %v820_v22 = vunpack.c.l.b16 %v763_v20  ;;  %v759_v23 = vpop.permute.xlu0 %758 }
 0x143   : > { %v795_v25 = vunpack.c.l.b16 %v759_v23 }
 0x144   : > { %v2515_v26 = vpack.c.b16 %v820_v22, %v819_v21 }
 0x145   : > { %v2517_v27 = vpack.c.b16 %v795_v25, %v794_v24 }
 0x146   : > { %822 = vrot.lane.b32.xlu1 %v2515_v26, %s2285_s17 }
 0x147   : > { %797 = vrot.lane.b32.xlu0 %v2517_v27, %s2285_s17 }
 0x14f   : > { %771 = vrot.lane.b32.xlu0 %v2510_v12, %s2285_s17  ;;  %s2806_s17 = sld [smem:[#allocation30_spill]] }
 0x188   : > { %v848_v28 = vpop.permute.xlu2 %847 }
 0x189   : > { %v853_v29 = vsel %vm773_vm1, %v848_v28, 0 }
 0x18a   : > { %862 = vmatpush.bf16.xpose.msrb.mxu0 %v853_v29 }
 0x191   : > { %1788 = vmatmul.msk.bf16.vlgmr.msrb.gmra.mxu0 %vm773_vm1, %v2512_v17 }
 0x1b8   : > { %v823_v30 = vpop.permute.xlu1 %822 }
 0x1b9   : > { %v798_v31 = vpop.permute.xlu0 %797  ;;  %v828_v32 = vsel %vm773_vm1, %v823_v30, 0 }
 0x1ba   : > { %v803_v33 = vsel %vm773_vm1, %v798_v31, 0  ;;  %837 = vmatpush.bf16.xpose.msra.mxu3 %v828_v32 }
 0x1bb   : > { %812 = vmatpush.bf16.xpose.msra.mxu2 %v803_v33 }
 0x1c1   : > { %v772_v34 = vpop.permute.xlu0 %771  ;;  %1787 = vmatmul.msk.bf16.vlgmr.msra.gmra.mxu3 %vm773_vm1, %v2515_v26 }
 0x1c2   : > { %1786 = vmatmul.msk.bf16.vlgmr.msra.gmra.mxu2 %vm773_vm1, %v2517_v27  ;;  %v778_v35 = vsel %vm773_vm1, %v772_v34, 0 }
 0x1c3   : > { %787 = vmatpush.bf16.xpose.msra.mxu1 %v778_v35 }
 0x1ca   : > { %1785 = vmatmul.msk.bf16.vlgmr.msra.gmra.mxu1 %vm773_vm1, %v2510_v12 }
 0x20e   : > { %v864_v43 = vpop.f32.mrf.mxu0 }
 0x20f   : > { %v875_v45 = vmul.f32 0.35355338, %v864_v43 }
 0x211   : > { %v896_v49 = vsel %vm877_vm2, %v875_v45, -inf }
 0x216   : > { %v866_v57 = vpop.f32.mrf.mxu0 }
 0x217   : > { %v876_v58 = vmul.f32 0.35355338, %v866_v57 }
 0x219   : > { %v899_v59 = vsel %vm877_vm2, %v876_v58, -inf }
 0x244   : > { %v839_v36 = vpop.f32.mrf.mxu3 }
 0x245   : > { %v814_v37 = vpop.f32.mrf.mxu2  ;;  %v873_v38 = vmul.f32 0.35355338, %v839_v36 }
 0x246   : > { %v871_v39 = vmul.f32 0.35355338, %v814_v37 }
 0x247   : > { %v789_v40 = vpop.f32.mrf.mxu1  ;;  %v890_v41 = vsel %vm877_vm2, %v873_v38, -inf }
 0x248   : > { %v884_v42 = vsel %vm877_vm2, %v871_v39, -inf  ;;  %891 = vmax.xlane.f32.xlu0 %v890_v41  ;;  %v2536_v44 = vmul.f32 0.35355338, %v789_v40 }
 0x249   : > { %885 = vmax.xlane.f32.xlu1 %v884_v42 }
 0x24a   : > { %v878_v48 = vsel %vm877_vm2, %v2536_v44, -inf }
 0x24c   : > { %v841_v51 = vpop.f32.mrf.mxu3 }
 0x24d   : > { %v816_v46 = vpop.f32.mrf.mxu2  ;;  %v874_v53 = vmul.f32 0.35355338, %v841_v51 }
 0x24e   : > { %v872_v47 = vmul.f32 0.35355338, %v816_v46 }
 0x24f   : > { %v791_v52 = vpop.f32.mrf.mxu1  ;;  %v893_v55 = vsel %vm877_vm2, %v874_v53, -inf }
 0x250   : > { %v887_v50 = vsel %vm877_vm2, %v872_v47, -inf  ;;  %879 = vmax.xlane.f32.xlu0 %v878_v48  ;;  %v870_v54 = vmul.f32 0.35355338, %v791_v52 }
 0x251   : > { %897 = vmax.xlane.f32.xlu1 %v896_v49  ;;  %888 = vmax.xlane.f32.xlu2 %v887_v50 }
 0x252   : > { %v881_v56 = vsel %vm877_vm2, %v870_v54, -inf }
 0x259   : > { %894 = vmax.xlane.f32.xlu2 %v893_v55  ;;  %882 = vmax.xlane.f32.xlu1 %v881_v56 }
 0x261   : > { %900 = vmax.xlane.f32.xlu2 %v899_v59 }
 0x2bb   : > { %v892_v60 = vpop.xlane.xlu0 %891 }
 0x2bc   : > { %v886_v61 = vpop.xlane.xlu1 %885  ;;  %v906_v62 = vsub.f32 %v873_v38, %v892_v60 }
 0x2bd   : > { %v904_v63 = vsub.f32 %v871_v39, %v886_v61 }
 0x2be   : > { %v918_v0 = vmul.f32 1.442695, %v906_v62 }
 0x2bf   : > { %v914_v1 = vmul.f32 1.442695, %v904_v63 }
 0x2c0   : > { %2002 = vpow2.f32 %v918_v0 }
 0x2c1   : > { %2004 = vpow2.f32 %v914_v1 }
 0x2c3   : > { %v880_v30 = vpop.xlane.xlu0 %879 }
 0x2c4   : > { %v898_v2 = vpop.xlane.xlu1 %897  ;;  %v889_v3 = vpop.xlane.xlu2 %888  ;;  %v902_v31 = vsub.f32 %v2536_v44, %v880_v30 }
 0x2c5   : > { %v908_v4 = vsub.f32 %v875_v45, %v898_v2  ;;  %v905_v8 = vsub.f32 %v872_v47, %v889_v3 }
 0x2c6   : > { %v2003_v5 = vpop.eup %2002  ;;  %v910_v34 = vmul.f32 1.442695, %v902_v31 }
 0x2c7   : > { %v2005_v6 = vpop.eup %2004  ;;  %v922_v7 = vmul.f32 1.442695, %v908_v4  ;;  %v938_v9 = vsel %vm877_vm2, %v2003_v5, 0.0  ;;  %v916_v11 = vmul.f32 1.442695, %v905_v8 }
 0x2c8   : > { %v932_v10 = vsel %vm877_vm2, %v2005_v6, 0.0  ;;  %939 = vadd.xlane.f32.xlu1 %v938_v9 }
 0x2c9   : > { %2006 = vpow2.f32 %v922_v7  ;;  %933 = vadd.xlane.f32.xlu2 %v932_v10 }
 0x2ca   : > { %2008 = vpow2.f32 %v916_v11 }
 0x2cc   : > { %v895_v13 = vpop.xlane.xlu2 %894  ;;  %v883_v32 = vpop.xlane.xlu1 %882 }
 0x2cd   : > { %v907_v14 = vsub.f32 %v874_v53, %v895_v13  ;;  %v903_v33 = vsub.f32 %v870_v54, %v883_v32 }
 0x2cf   : > { %v2007_v15 = vpop.eup %2006  ;;  %v920_v16 = vmul.f32 1.442695, %v907_v14  ;;  %v912_v35 = vmul.f32 1.442695, %v903_v33 }
 0x2d0   : > { %v944_v18 = vsel %vm877_vm2, %v2007_v15, 0.0  ;;  %v2009_v20 = vpop.eup %2008 }
 0x2d1   : > { %2010 = vpow2.f32 %v920_v16  ;;  %945 = vadd.xlane.f32.xlu0 %v944_v18  ;;  %v935_v25 = vsel %vm877_vm2, %v2009_v20, 0.0 }
 0x2d4   : > { %v901_v19 = vpop.xlane.xlu2 %900 }
 0x2d5   : > { %v909_v21 = vsub.f32 %v876_v58, %v901_v19 }
 0x2d7   : > { %v2011_v22 = vpop.eup %2010  ;;  %v924_v23 = vmul.f32 1.442695, %v909_v21 }
 0x2d8   : > { %v941_v24 = vsel %vm877_vm2, %v2011_v22, 0.0 }
 0x2d9   : > { %2012 = vpow2.f32 %v924_v23  ;;  %942 = vadd.xlane.f32.xlu2 %v941_v24  ;;  %936 = vadd.xlane.f32.xlu0 %v935_v25 }
 0x2da   : > { %2014 = vpow2.f32 %v910_v34 }
 0x2db   : > { %2016 = vpow2.f32 %v912_v35 }
 0x2df   : > { %v2550_v28 = vpop.eup %2012 }
 0x2e0   : > { %v947_v29 = vsel %vm877_vm2, %v2550_v28, 0.0 }
 0x2e1   : > { %948 = vadd.xlane.f32.xlu1 %v947_v29 }
 0x2ed   : > { %1041 = vrot.lane.b32.xlu0 %v2515_v26, %s2777_s18  ;;  %v2563_v26 = vpop.eup %2014 }
 0x2ee   : > { %v2565_v36 = vpop.eup %2016 }
 0x2f1   : > { %1016 = vrot.lane.b32.xlu2 %v2517_v27, %s2777_s18 }
 0x2fa   : > { %1066 = vrot.lane.b32.xlu1 %v2512_v17, %s2777_s18  ;;  %v926_v17 = vsel %vm877_vm2, %v2563_v26, 0.0 }
 0x302   : > { %991 = vrot.lane.b32.xlu1 %v2510_v12, %s2777_s18  ;;  %v929_v12 = vsel %vm877_vm2, %v2565_v36, 0.0 }
 0x317   : > { %927 = vadd.xlane.f32.xlu0 %v926_v17 }
 0x31a   : > { %930 = vadd.xlane.f32.xlu2 %v929_v12 }
 0x33b   : > { %v940_v27 = vpop.xlane.xlu1 %939 }
 0x33c   : > { %v934_v37 = vpop.xlane.xlu2 %933  ;;  %2018 = vrcp.f32 %v940_v27  ;;  %v1880_v27 = vld [vmem:[%s2805_s27 + $0x8] sm:$0xff] }
 0x33d   : > { %2020 = vrcp.f32 %v934_v37  ;;  %v1879_v37 = vld [vmem:[%s2805_s27] sm:$0xff] }
 0x342   : > { %v2019_v38 = vpop.eup %2018 }
 0x343   : > { %v2021_v39 = vpop.eup %2020  ;;  %v962_v40 = vmul.f32 %v2019_v38, %v2003_v5 }
 0x344   : > { %v960_v41 = vmul.f32 %v2021_v39, %v2005_v6  ;;  %v946_v42 = vpop.xlane.xlu0 %945 }
 0x345   : > { %v976_v43 = vpack.c.bf16 %v962_v40, %v962_v40  ;;  %2022 = vrcp.f32 %v946_v42 }
 0x346   : > { %v971_v44 = vpack.c.bf16 %v960_v41, %v960_v41 }
 0x347   : > { %1791 = vst.msk [vmem:[%s2575_s23 + $0x10] sm:$0xf] %vm968_vm3, %v976_v43  ;;  %v1038_v2 = vunpack.c.l.b16 %v976_v43 }
 0x348   : > { %1789 = vst.msk [vmem:[%s2575_s23 + $0x8] sm:$0xf] %vm968_vm3, %v971_v44  ;;  %v1013_v58 = vunpack.c.l.b16 %v971_v44 }
 0x34b   : > { %v2023_v45 = vpop.eup %2022 }
 0x34c   : > { %v964_v46 = vmul.f32 %v2023_v45, %v2007_v15  ;;  %v943_v47 = vpop.xlane.xlu2 %942  ;;  %v937_v48 = vpop.xlane.xlu0 %936  ;;  %v707_v45 = vld [vmem:[%s2503_s21] sm:$0xff]   ;;  %s1617_s21 = sshll.u32 %s2575_s23, 4  ;;  %s1618_s21 = int_to_ptr.vmem [resolvable:$true] %s1617_s21 }
 0x34d   : > { %2024 = vrcp.f32 %v943_v47  ;;  %v1174_v47 = vunpack.c.l.bf16 %v707_v45 }
 0x34e   : > { %v981_v49 = vpack.c.bf16 %v964_v46, %v964_v46  ;;  %2026 = vrcp.f32 %v937_v48  ;;  %v1992_v46 = vld [vmem:[%s2806_s17] ss:$0 sm:$0xff]  ;;  %s1616_s17 = scalar_lea.hbm %s2767_s20, %s1893_s29 }
 0x34f   : > { %s1619_s1 = sshll.u32 %s1616_s17, 4  ;;  %s1620_s1 = int_to_ptr.hbm [resolvable:$true] %s1619_s1 }
 0x350   : > { %1793 = vst.msk [vmem:[%s2575_s23 + $0x18] sm:$0xf] %vm968_vm3, %v981_v49  ;;  %v1063_v5 = vunpack.c.l.b16 %v981_v49 }
 0x353   : > { %v2025_v50 = vpop.eup %2024 }
 0x354   : > { %v2027_v51 = vpop.eup %2026  ;;  %v963_v52 = vmul.f32 %v2025_v50, %v2011_v22  ;;  %v1017_v53 = vpop.permute.xlu2 %1016 }
 0x355   : > { %v949_v54 = vpop.xlane.xlu1 %948  ;;  %v961_v55 = vmul.f32 %v2027_v51, %v2009_v20  ;;  %1029 = vmatpush.bf16.msrb.mxu2 %v1017_v53 }
 0x356   : > { %2028 = vrcp.f32 %v949_v54  ;;  %v977_v56 = vpack.c.bf16 %v963_v52, %v963_v52  ;;  %v1175_v52 = vunpack.c.h.bf16 %v707_v45 }
 0x357   : > { %v972_v57 = vpack.c.bf16 %v961_v55, %v961_v55 }
 0x358   : > { %1792 = vst.msk [vmem:[%s2575_s23 + $0x14] sm:$0xf] %vm968_vm3, %v977_v56  ;;  %v1039_v63 = vunpack.c.l.b16 %v977_v56 }
 0x359   : > { %v1014_v59 = vunpack.c.l.b16 %v972_v57  ;;  %1790 = vst.msk [vmem:[%s2575_s23 + $0xc] sm:$0xf] %vm968_vm3, %v972_v57  ;;  %v2290_v57 = vmov 32.0  }
 0x35a   : > { %v1040_v3 = vpack.c.b16 %v1039_v63, %v1038_v2 }
 0x35b   : > { %v1015_v61 = vpack.c.b16 %v1014_v59, %v1013_v58 }
 0x35c   : > { %v2029_v60 = vpop.eup %2028 }
 0x35d   : > { %v965_v62 = vmul.f32 %v2029_v60, %v2550_v28  ;;  %1796 = vmatmul.msk.bf16.vlgmr.msrb.gmra.mxu2 %vm877_vm2, %v1015_v61 }
 0x35f   : > { %v982_v0 = vpack.c.bf16 %v965_v62, %v965_v62  ;;  %v1042_v1 = vpop.permute.xlu0 %1041 }
 0x360   : > { %1054 = vmatpush.bf16.msrb.mxu3 %v1042_v1 }
 0x361   : > { %1794 = vst.msk [vmem:[%s2575_s23 + $0x1c] sm:$0xf] %vm968_vm3, %v982_v0  ;;  %v1064_v4 = vunpack.c.l.b16 %v982_v0 }
 0x363   : > { %1797 = vmatmul.msk.bf16.vlgmr.msrb.gmra.mxu3 %vm877_vm2, %v1040_v3  ;;  %v1065_v7 = vpack.c.b16 %v1064_v4, %v1063_v5 }
 0x36c   : > { %v1067_v6 = vpop.permute.xlu1 %1066 }
 0x36d   : > { %1079 = vmatpush.bf16.msra.mxu0 %v1067_v6 }
 0x370   : > { %1798 = vmatmul.msk.bf16.vlgmr.msra.gmra.mxu0 %vm877_vm2, %v1065_v7 }
 0x374   : > { %v992_v8 = vpop.permute.xlu1 %991 }
 0x375   : > { %1004 = vmatpush.bf16.msrb.mxu1 %v992_v8 }
 0x379   : > { %1166 = vmatpush.bf16.msra.mxu1 %v1880_v27 }
 0x37d   : > { %1167 = vmatpush.bf16.msra.mxu1 %v1879_v37 }
 0x38a   : > { %v928_v9 = vpop.xlane.xlu0 %927 }
 0x38b   : > { %2030 = vrcp.f32 %v928_v9 }
 0x38d   : > { %v931_v10 = vpop.xlane.xlu2 %930 }
 0x38e   : > { %2032 = vrcp.f32 %v931_v10  ;;  %v1882_v10 = vld [vmem:[#allocation4 + $0x8] sm:$0xff] }
 0x38f   : > { %2034 = vrcp.f32 %v2290_v57  ;;  %1271 = vmatpush.bf16.msra.mxu2 %v1882_v10 }
 0x391   : > { %v2031_v11 = vpop.eup %2030 }
 0x392   : > { %v958_v13 = vmul.f32 %v2031_v11, %v2563_v26 }
 0x394   : > { %v2033_v14 = vpop.eup %2032  ;;  %v966_v15 = vpack.c.bf16 %v958_v13, %v958_v13 }
 0x395   : > { %v959_v16 = vmul.f32 %v2033_v14, %v2565_v36  ;;  %v2035_v58 = vpop.eup %2034  ;;  %v1881_v14 = vld [vmem:[#allocation4] sm:$0xff] }
 0x396   : > { %969 = vst.msk [vmem:[%s2575_s23] sm:$0xf] %vm968_vm3, %v966_v15  ;;  %v988_v19 = vunpack.c.l.b16 %v966_v15  ;;  %v1187_v59 = vmul.f32 32.0, %v2035_v58  ;;  %vm1191_vm8 = vweird.f32 %v2035_v58  ;;  %1272 = vmatpush.bf16.msra.mxu2 %v1881_v14  ;;  %v1890_v14 = vld [vmem:[#allocation7 + $0x8] sm:$0xff] }
 0x397   : > { %v967_v18 = vpack.c.bf16 %v959_v16, %v959_v16  ;;  %1446 = vmatpush.bf16.msrb.mxu0 %v1890_v14 }
 0x398   : > { %v1188_v60 = vsub.f32 1.0, %v1187_v59 }
 0x399   : > { %v989_v20 = vunpack.c.l.b16 %v967_v18  ;;  %970 = vst.msk [vmem:[%s2575_s23 + $0x4] sm:$0xf] %vm968_vm3, %v967_v18 }
 0x39a   : > { %v1189_v61 = vmul.f32 %v2035_v58, %v1188_v60 }
 0x39b   : > { %v990_v21 = vpack.c.b16 %v989_v20, %v988_v19 }
 0x39c   : > { %v1190_v62 = vadd.f32 %v2035_v58, %v1189_v61 }
 0x39d   : > { %1795 = vmatmul.msk.bf16.vlgmr.msrb.gmra.mxu1 %vm877_vm2, %v990_v21 }
 0x39e   : > { %v2613_v63 = vsel %vm1191_vm8, %v2035_v58, %v1190_v62 }
 0x3e0   : > { %v1031_v22 = vpop.f32.mrf.mxu2 }
 0x3e1   : > { %v1088_v23 = vpack.c.bf16 %v1031_v22, %v1031_v22 }
 0x3e3   : > { %1099 = vrot.lane.b32.xlu1 %v1088_v23, %s2287_s24 }
 0x3e6   : > { %v1056_v24 = vpop.f32.mrf.mxu3 }
 0x3e7   : > { %v1090_v25 = vpack.c.bf16 %v1056_v24, %v1056_v24 }
 0x3e8   : > { %v1033_v29 = vpop.f32.mrf.mxu2 }
 0x3e9   : > { %v1089_v31 = vpack.c.bf16 %v1033_v29, %v1033_v29 }
 0x3eb   : > { %1110 = vrot.lane.b32.xlu1 %v1090_v25, %s2288_s30 }
 0x3ed   : > { %v1081_v28 = vpop.f32.mrf.mxu0 }
 0x3ee   : > { %v1092_v30 = vpack.c.bf16 %v1081_v28, %v1081_v28  ;;  %v1058_v33 = vpop.f32.mrf.mxu3 }
 0x3ef   : > { %v1091_v35 = vpack.c.bf16 %v1058_v33, %v1058_v33 }
 0x3f0   : > { %1121 = vrot.lane.b32.xlu0 %v1092_v30, %s2289_s25 }
 0x3f3   : > { %1101 = vrot.lane.b32.xlu1 %v1089_v31, %s2287_s24  ;;  %s1591_s24 = scalar_lea.sflag [#allocation14], %s2572_s19 }
 0x3f5   : > { %v1083_v32 = vpop.f32.mrf.mxu0 }
 0x3f6   : > { %v1093_v34 = vpack.c.bf16 %v1083_v32, %v1083_v32 }
 0x3f8   : > { %1123 = vrot.lane.b32.xlu2 %v1093_v34, %s2289_s25  ;;  %v1993_v34 = vld [vmem:[%s2807_s5] ss:$0 sm:$0xff] }
 0x3fb   : > { %1112 = vrot.lane.b32.xlu1 %v1091_v35, %s2288_s30  ;;  %s2182_s30 = sshra.s32 %s1620_s1, 4  ;;  %s2183_s30 = int_to_ptr.hbm [resolvable:$true] %s2182_s30 }
 0x3fc   : > { %s2184_s25 = scalar_lea.hbm %s2183_s30, 32  ;;  %p2189_p3 = scmp.lt.s32.totalorder %s2183_s30, %s2767_s20 }
 0x3fd   : > { %p2185_p0 = scmp.ne.s32.totalorder %s2183_s30, %s2184_s25  ;;  %p2190_p4 = scmp.lt.s32.totalorder %s2188_s3, %s2184_s25 }
 0x3ff   : > { %p2186_p1 = pnand %p2185_p0, %p2435_p5  ;;  %p2191_p7 = por %p2190_p4, %p2189_p3 }
 0x401   : > { %p2187_p2 = pneg %p2186_p1 }
 0x403   : > { %p2192_p8 = pnand %p2191_p7, %p2187_p2 }
 0x41a   : > { %v1006_v26 = vpop.f32.mrf.mxu1 }
 0x41b   : > { %v1086_v36 = vpack.c.bf16 %v1006_v26, %v1006_v26 }
 0x41d   : > { %1095 = vst.msk [vmem:[#allocation2] sm:$0xf] %vm1094_vm4, %v1086_v36 }
 0x422   : > { %v1008_v17 = vpop.f32.mrf.mxu1 }
 0x423   : > { %v1087_v12 = vpack.c.bf16 %v1008_v17, %v1008_v17  ;;  %v1994_v17 = vld [vmem:[%s2753_s6] ss:$0 sm:$0xff] }
 0x425   : > { %1096 = vst.msk [vmem:[#allocation2 + $0x4] sm:$0xf] %vm1094_vm4, %v1087_v12 }
 0x452   : > { %v1124_v43 = vpop.permute.xlu2 %1123 }
 0x455   : > { %v1100_v38 = vpop.permute.xlu1 %1099 }
 0x456   : > { %1106 = vst.msk [vmem:[#allocation2] sm:$0xf] %vm1105_vm5, %v1100_v38 }
 0x45d   : > { %v1111_v39 = vpop.permute.xlu1 %1110 }
 0x45e   : > { %1117 = vst.msk [vmem:[#allocation2] sm:$0xf] %vm1116_vm6, %v1111_v39 }
 0x462   : > { %v1122_v40 = vpop.permute.xlu0 %1121 }
 0x463   : > { %1128 = vst.msk [vmem:[#allocation2] sm:$0xf] %vm1127_vm7, %v1122_v40 }
 0x465   : > { %v1102_v41 = vpop.permute.xlu1 %1101 }
 0x466   : > { %1107 = vst.msk [vmem:[#allocation2 + $0x4] sm:$0xf] %vm1105_vm5, %v1102_v41  ;;  %v1886_v41 = vld [vmem:[%s2756_s9 + $0x18] sm:$0xff] }
 0x467   : > { %1326 = vmatpush.bf16.msra.mxu3 %v1886_v41 }
 0x46d   : > { %v1113_v42 = vpop.permute.xlu1 %1112 }
 0x46e   : > { %1118 = vst.msk [vmem:[#allocation2 + $0x4] sm:$0xf] %vm1116_vm6, %v1113_v42  ;;  %v1885_v42 = vld [vmem:[%s2756_s9 + $0x10] sm:$0xff] }
 0x46f   : > { %1129 = vst.msk [vmem:[#allocation2 + $0x4] sm:$0xf] %vm1127_vm7, %v1124_v43  ;;  %1327 = vmatpush.bf16.msra.mxu3 %v1885_v42  ;;  %v1884_v43 = vld [vmem:[%s2756_s9 + $0x8] sm:$0xff] }
 0x473   : > { %1328 = vmatpush.bf16.msra.mxu3 %v1884_v43 }
 0x476   : > { %v1878_v44 = vld [vmem:[#allocation2] sm:$0xff] }
 0x477   : > { %1811 = vmatmul.msk.bf16.vlgmr.msra.gmra.mxu1 %vm734_vm0, %v1878_v44  ;;  %v1883_v44 = vld [vmem:[%s2756_s9] sm:$0xff] }
 0x478   : > { %1329 = vmatpush.bf16.msra.mxu3 %v1883_v44 }
 0x4f4   : > { %v1169_v48 = vpop.f32.mrf.mxu1 }
 0x4f5   : > { %v1170_v49 = vadd.f32 %v1992_v46, %v1169_v48 }
 0x4f7   : > { %v1176_v50 = vadd.f32 %v1174_v47, %v1170_v49 }
 0x4f9   : > { %v1180_v51 = vsel %vm734_vm0, %v1176_v50, 0.0 }
 0x4fa   : > { %1181 = vadd.xlane.f32.xlu1 %v1180_v51 }
 0x4fc   : > { %v1171_v53 = vpop.f32.mrf.mxu1 }
 0x4fd   : > { %v1172_v54 = vadd.f32 %v1992_v46, %v1171_v53  ;;  %v1995_v46 = vld [vmem:[%s2755_s8] ss:$0 sm:$0xff] }
 0x4fe   : > { %v1996_v53 = vld [vmem:[%s2757_s10] ss:$0 sm:$0xff] }
 0x4ff   : > { %v1177_v55 = vadd.f32 %v1175_v52, %v1172_v54 }
 0x501   : > { %v1183_v56 = vsel %vm734_vm0, %v1177_v55, 0.0 }
 0x502   : > { %1184 = vadd.xlane.f32.xlu0 %v1183_v56 }
 0x56d   : > { %v1182_v0 = vpop.xlane.xlu1 %1181 }
 0x56e   : > { %v1193_v1 = vmul.f32 %v2613_v63, %v1182_v0 }
 0x570   : > { %v1195_v2 = vsub.f32 %v1176_v50, %v1193_v1 }
 0x572   : > { %v1197_v3 = vmul.f32 %v1195_v2, %v1195_v2 }
 0x574   : > { %v1199_v4 = vsel %vm734_vm0, %v1197_v3, 0.0 }
 0x575   : > { %v1185_v5 = vpop.xlane.xlu0 %1184  ;;  %1200 = vadd.xlane.f32.xlu2 %v1199_v4 }
 0x576   : > { %v1194_v6 = vmul.f32 %v2613_v63, %v1185_v5 }
 0x578   : > { %v1196_v7 = vsub.f32 %v1177_v55, %v1194_v6 }
 0x57a   : > { %v1198_v8 = vmul.f32 %v1196_v7, %v1196_v7 }
 0x57c   : > { %v1202_v9 = vsel %vm734_vm0, %v1198_v8, 0.0 }
 0x57d   : > { %1203 = vadd.xlane.f32.xlu1 %v1202_v9 }
 0x5e8   : > { %v1201_v11 = vpop.xlane.xlu2 %1200 }
 0x5e9   : > { %v1205_v13 = vmul.f32 %v1201_v11, %v2613_v63  ;;  %v1888_v11 = vld [vmem:[#allocation9 + $0x8] sm:$0xff] }
 0x5ea   : > { %1480 = vmatpush.bf16.msrb.mxu1 %v1888_v11 }
 0x5eb   : > { %v1207_v15 = vadd.f32 1e-05, %v1205_v13 }
 0x5ed   : > { %2036 = vrsqrt.f32 %v1207_v15  ;;  %vm1215_vm10 = vweird.f32 %v1207_v15 }
 0x5f0   : > { %v1204_v16 = vpop.xlane.xlu1 %1203 }
 0x5f1   : > { %v1206_v18 = vmul.f32 %v1204_v16, %v2613_v63  ;;  %v1887_v16 = vld [vmem:[#allocation9] sm:$0xff] }
 0x5f2   : > { %1481 = vmatpush.bf16.msrb.mxu1 %v1887_v16 }
 0x5f3   : > { %v2037_v19 = vpop.eup %2036  ;;  %v1208_v20 = vadd.f32 1e-05, %v1206_v18  ;;  %v1889_v18 = vld [vmem:[#allocation7] sm:$0xff] }
 0x5f4   : > { %v1210_v21 = vmul.f32 %v2037_v19, %v1207_v15  ;;  %vm1216_vm9 = vweird.f32 %v2037_v19  ;;  %v1892_v15 = vld [vmem:[#allocation10 + $0x8] sm:$0xff]  ;;  %1447 = vmatpush.bf16.msrb.mxu0 %v1889_v18 }
 0x5f5   : > { %2038 = vrsqrt.f32 %v1208_v20  ;;  %vm1217_vm11 = vmor %vm1215_vm10, %vm1216_vm9  ;;  %vm1225_vm13 = vweird.f32 %v1208_v20  ;;  %1518 = vmatpush.bf16.msrb.mxu2 %v1892_v15 }
 0x5f6   : > { %v1211_v22 = vmul.f32 %v2037_v19, %v1210_v21  ;;  %v1891_v21 = vld [vmem:[#allocation10] sm:$0xff] }
 0x5f8   : > { %v1212_v23 = vmul.f32 0.5, %v1211_v22 }
 0x5f9   : > { %1519 = vmatpush.bf16.msrb.mxu2 %v1891_v21 }
 0x5fa   : > { %v1213_v24 = vsub.f32 1.5, %v1212_v23 }
 0x5fb   : > { %v2039_v25 = vpop.eup %2038 }
 0x5fc   : > { %v1214_v28 = vmul.f32 %v2037_v19, %v1213_v24  ;;  %v1220_v29 = vmul.f32 %v2039_v25, %v1208_v20  ;;  %vm1226_vm12 = vweird.f32 %v2039_v25 }
 0x5fd   : > { %vm1227_vm14 = vmor %vm1225_vm13, %vm1226_vm12 }
 0x5fe   : > { %v1221_v30 = vmul.f32 %v2039_v25, %v1220_v29  ;;  %v1218_v31 = vsel %vm1217_vm11, %v2037_v19, %v1214_v28 }
 0x5ff   : > { %v1229_v35 = vmul.f32 %v1218_v31, %v1195_v2 }
 0x600   : > { %v1222_v32 = vmul.f32 0.5, %v1221_v30 }
 0x601   : > { %v1234_v12 = vmul.f32 %v1993_v34, %v1229_v35 }
 0x602   : > { %v1223_v33 = vsub.f32 1.5, %v1222_v32 }
 0x603   : > { %v1239_v38 = vadd.f32 %v1994_v17, %v1234_v12 }
 0x604   : > { %v1224_v26 = vmul.f32 %v2039_v25, %v1223_v33 }
 0x606   : > { %v1228_v36 = vsel %vm1227_vm14, %v2039_v25, %v1224_v26 }
 0x607   : > { %v1230_v27 = vmul.f32 %v1228_v36, %v1196_v7  ;;  %v1998_v36 = vld [vmem:[%s2759_s12] ss:$0 sm:$0xff] }
 0x609   : > { %v1235_v37 = vmul.f32 %v1993_v34, %v1230_v27 }
 0x60b   : > { %v1240_v39 = vadd.f32 %v1994_v17, %v1235_v37  ;;  %v1398_v37 = vlaneseq }
 0x60d   : > { %v1241_v40 = vpack.c.bf16 %v1240_v39, %v1239_v38  ;;  %v2660_v41 = vshrl.u32 %v1398_v37, 7 }
 0x60f   : > { %1820 = vmatmul.msk.bf16.vlgmr.msra.gmra.mxu2 %vm734_vm0, %v1241_v40  ;;  %vm1400_vm7 = vcmp.lt.s32.totalorder %v2660_v41, 1  ;;  %vm1407_vm8 = vcmp.lt.s32.totalorder %v2660_v41, 7 }
 0x692   : > { %v1274_v45 = vpop.f32.mrf.mxu2 }
 0x693   : > { %v1275_v47 = vadd.f32 %v1995_v46, %v1274_v45 }
 0x695   : > { %v1279_v50 = vmax.f32 %v1275_v47, 0.0 }
 0x69a   : > { %v1276_v48 = vpop.f32.mrf.mxu2 }
 0x69b   : > { %v1277_v49 = vadd.f32 %v1995_v46, %v1276_v48 }
 0x69d   : > { %v1280_v51 = vmax.f32 %v1277_v49, 0.0 }
 0x69f   : > { %v1281_v52 = vpack.c.bf16 %v1280_v51, %v1279_v50 }
 0x6a1   : > { %1837 = vmatmul.msk.bf16.vlgmr.msra.gmra.mxu3 %vm1318_vm15, %v1281_v52 }
 0x724   : > { %v1331_v54 = vpop.f32.mrf.mxu3 }
 0x725   : > { %v1332_v55 = vadd.f32 %v1996_v53, %v1331_v54 }
 0x727   : > { %v1336_v56 = vadd.f32 %v1332_v55, %v1239_v38 }
 0x729   : > { %v1340_v57 = vsel %vm734_vm0, %v1336_v56, 0.0 }
 0x72a   : > { %1341 = vadd.xlane.f32.xlu1 %v1340_v57 }
 0x72c   : > { %v1333_v58 = vpop.f32.mrf.mxu3 }
 0x72d   : > { %v1334_v59 = vadd.f32 %v1996_v53, %v1333_v58 }
 0x72f   : > { %v1337_v60 = vadd.f32 %v1334_v59, %v1240_v39 }
 0x731   : > { %v1343_v61 = vsel %vm734_vm0, %v1337_v60, 0.0 }
 0x732   : > { %1344 = vadd.xlane.f32.xlu1 %v1343_v61 }
 0x79d   : > { %v1342_v62 = vpop.xlane.xlu1 %1341 }
 0x79e   : > { %v1346_v0 = vmul.f32 %v1342_v62, %v2613_v63 }
 0x7a0   : > { %v1348_v1 = vsub.f32 %v1336_v56, %v1346_v0 }
 0x7a2   : > { %v1350_v2 = vmul.f32 %v1348_v1, %v1348_v1 }
 0x7a4   : > { %v1352_v3 = vsel %vm734_vm0, %v1350_v2, 0.0 }
 0x7a5   : > { %1353 = vadd.xlane.f32.xlu0 %v1352_v3  ;;  %v1345_v4 = vpop.xlane.xlu1 %1344 }
 0x7a6   : > { %v1347_v5 = vmul.f32 %v1345_v4, %v2613_v63 }
 0x7a8   : > { %v1349_v6 = vsub.f32 %v1337_v60, %v1347_v5 }
 0x7aa   : > { %v1351_v7 = vmul.f32 %v1349_v6, %v1349_v6 }
 0x7ac   : > { %v1355_v8 = vsel %vm734_vm0, %v1351_v7, 0.0 }
 0x7ad   : > { %1356 = vadd.xlane.f32.xlu2 %v1355_v8 }
 0x818   : > { %v1354_v9 = vpop.xlane.xlu0 %1353 }
 0x819   : > { %v1358_v10 = vmul.f32 %v1354_v9, %v2613_v63 }
 0x81b   : > { %v1360_v13 = vadd.f32 1e-05, %v1358_v10 }
 0x81d   : > { %2040 = vrsqrt.f32 %v1360_v13  ;;  %vm1368_vm2 = vweird.f32 %v1360_v13 }
 0x820   : > { %v1357_v19 = vpop.xlane.xlu2 %1356 }
 0x821   : > { %v1359_v20 = vmul.f32 %v1357_v19, %v2613_v63  ;;  %v1997_v63 = vld [vmem:[%s2758_s11] ss:$0 sm:$0xff] }
 0x823   : > { %v2041_v22 = vpop.eup %2040  ;;  %v1361_v23 = vadd.f32 1e-05, %v1359_v20 }
 0x824   : > { %v1363_v24 = vmul.f32 %v2041_v22, %v1360_v13  ;;  %vm1369_vm1 = vweird.f32 %v2041_v22 }
 0x825   : > { %2042 = vrsqrt.f32 %v1361_v23  ;;  %vm1370_vm3 = vmor %vm1368_vm2, %vm1369_vm1  ;;  %vm1378_vm5 = vweird.f32 %v1361_v23 }
 0x826   : > { %v1364_v25 = vmul.f32 %v2041_v22, %v1363_v24 }
 0x828   : > { %v1365_v28 = vmul.f32 0.5, %v1364_v25 }
 0x82a   : > { %v1366_v29 = vsub.f32 1.5, %v1365_v28 }
 0x82b   : > { %v2043_v30 = vpop.eup %2042 }
 0x82c   : > { %v1367_v31 = vmul.f32 %v2041_v22, %v1366_v29  ;;  %v1373_v32 = vmul.f32 %v2043_v30, %v1361_v23  ;;  %vm1379_vm4 = vweird.f32 %v2043_v30 }
 0x82d   : > { %vm1380_vm6 = vmor %vm1378_vm5, %vm1379_vm4 }
 0x82e   : > { %v1371_v33 = vsel %vm1370_vm3, %v2041_v22, %v1367_v31  ;;  %v1374_v34 = vmul.f32 %v2043_v30, %v1373_v32 }
 0x82f   : > { %v1382_v35 = vmul.f32 %v1371_v33, %v1348_v1 }
 0x830   : > { %v1375_v26 = vmul.f32 0.5, %v1374_v34 }
 0x831   : > { %v1387_v17 = vmul.f32 %v1997_v63, %v1382_v35 }
 0x832   : > { %v1376_v12 = vsub.f32 1.5, %v1375_v26 }
 0x833   : > { %v1392_v38 = vadd.f32 %v1998_v36, %v1387_v17 }
 0x834   : > { %v1377_v27 = vmul.f32 %v2043_v30, %v1376_v12 }
 0x835   : > { %v1394_v43 = vpack.c.bf16 %v1392_v38, %v1392_v38  ;;  %v1396_v45 = vrot.slane %v1392_v38, 7  ;;  %v1405_v46 = vrot.slane %v1392_v38, 1 }
 0x836   : > { %v1381_v39 = vsel %vm1380_vm6, %v2043_v30, %v1377_v27 }
 0x837   : > { %v1383_v40 = vmul.f32 %v1381_v39, %v1349_v6  ;;  %v1456_v50 = vunpack.c.l.b16 %v1394_v43 }
 0x839   : > { %v1388_v42 = vmul.f32 %v1997_v63, %v1383_v40 }
 0x83b   : > { %v1393_v44 = vadd.f32 %v1998_v36, %v1388_v42 }
 0x83d   : > { %v1397_v47 = vrot.slane %v1393_v44, 7  ;;  %v1406_v48 = vrot.slane %v1393_v44, 1  ;;  %v1395_v49 = vpack.c.bf16 %v1393_v44, %v1393_v44 }
 0x83f   : > { %v1457_v51 = vunpack.c.l.b16 %v1395_v49  ;;  %v1401_v52 = vsel %vm1400_vm7, %v1396_v45, %v1397_v47  ;;  %v1402_v53 = vsel %vm1400_vm7, %v1397_v47, %v1396_v45  ;;  %v1408_v54 = vsel %vm1407_vm8, %v1405_v46, %v1406_v48 }
 0x840   : > { %v1403_v55 = vpack.c.bf16 %v1402_v53, %v1402_v53  ;;  %v1404_v56 = vpack.c.bf16 %v1401_v52, %v1401_v52  ;;  %v1409_v57 = vsel %vm1407_vm8, %v1406_v48, %v1405_v46  ;;  %v1410_v58 = vpack.c.bf16 %v1408_v54, %v1408_v54 }
 0x841   : > { %v1458_v59 = vpack.c.b16 %v1457_v51, %v1456_v50  ;;  %v1411_v60 = vpack.c.bf16 %v1409_v57, %v1409_v57 }
 0x842   : > { %v1422_v61 = vunpack.c.l.b16 %v1403_v55  ;;  %v1423_v62 = vunpack.c.l.b16 %v1404_v56  ;;  %v1494_v0 = vunpack.c.l.b16 %v1410_v58 }
 0x843   : > { %1855 = vmatmul.msk.bf16.vlgmr.msrb.gmra.mxu1 %vm734_vm0, %v1458_v59  ;;  %v1495_v1 = vunpack.c.l.b16 %v1411_v60 }
 0x844   : > { %v1424_v2 = vpack.c.b16 %v1423_v62, %v1422_v61 }
 0x845   : > { %v1496_v3 = vpack.c.b16 %v1495_v1, %v1494_v0 }
 0x846   : > { %1846 = vmatmul.msk.bf16.vlgmr.msrb.gmra.mxu0 %vm734_vm0, %v1424_v2 }
 0x847   : > { %1864 = vmatmul.msk.bf16.vlgmr.msrb.gmra.mxu2 %vm734_vm0, %v1496_v3 }
 0x848   : > { %2195 = shalt.err (!%p2192_p8)
}
 0x849   : > { %s2291_s23 = smov 4   ;;  %s2808_s29 = smov 64   ;;  %v1999_v7 = vld [vmem:[%s2763_s16] ss:$0 sm:$0xff]  ;;  %v1558_v63 = vadd.s32 8, %v2660_v41  ;;  %vm1559_vm11 = vcmp.eq.s32.totalorder %v2660_v41, 0 }
 0x84a   : > { %1911 = dma.vmem_to_hbm [thread:$0]  (%p2435_p5), %s1618_s21, 512, %s1620_s1, %s1591_s24, %s2808_s29, %s2808_s29, %s2291_s23   ;;  %vm1583_vm13 = vcmask 257024  }
 0x84b   : > { %s2809_s17 = sld [smem:[#allocation34_spill]]  ;;  %vm1568_vm12 = vcmp.eq.s32.totalorder %v1558_v63, 15  ;;  %s1768_s21 = sshll.u32 %s2572_s19, 2 }
 0x84c   : > { %s2810_s0 = sld [smem:[#allocation35_spill]]  ;;  %s1869_s1 = sshll.u32 %s2418_s2, 2 }
 0x84d   : > { %s2811_s3 = sld [smem:[#allocation36_spill]]  ;;  %s693_s29 = scalar_lea.vmem [#allocation12], %s1768_s21 }
 0x84e   : > { %s1603_s13 = sshll.u32 %s693_s29, 4  ;;  %s1586_s5 = scalar_lea.sflag [#allocation6], %s2572_s19  ;;  %s1604_s13 = int_to_ptr.vmem [resolvable:$true] %s1603_s13 }
 0x851   : > { %v2000_v10 = vld [vmem:[%s2809_s17] ss:$0 sm:$0xff] }
 0x852   : > { %v2001_v13 = vld [vmem:[%s2810_s0] ss:$0 sm:$0xff] }
 0x853   : > { %s1601_s23 = scalar_lea.hbm %s2811_s3, %s1869_s1  ;;  %s2216_s25 = scalar_lea.hbm %s2811_s3, 8 }
 0x854   : > { %s1605_s7 = sshll.u32 %s1601_s23, 4  ;;  %s1606_s7 = int_to_ptr.hbm [resolvable:$true] %s1605_s7 }
 0x855   : > { %s2210_s18 = sshra.s32 %s1606_s7, 4  ;;  %s2211_s18 = int_to_ptr.hbm [resolvable:$true] %s2210_s18 }
 0x856   : > { %s2212_s2 = scalar_lea.hbm %s2211_s18, 4  ;;  %p2217_p12 = scmp.lt.s32.totalorder %s2211_s18, %s2811_s3 }
 0x857   : > { %p2213_p9 = scmp.ne.s32.totalorder %s2211_s18, %s2212_s2  ;;  %p2218_p13 = scmp.lt.s32.totalorder %s2216_s25, %s2212_s2 }
 0x859   : > { %p2214_p10 = pnand %p2213_p9, %p2435_p5  ;;  %p2219_p0 = por %p2218_p13, %p2217_p12 }
 0x85b   : > { %p2215_p11 = pneg %p2214_p10 }
 0x85d   : > { %p2220_p1 = pnand %p2219_p0, %p2215_p11 }
 0x8c0   : > { %v1483_v5 = vpop.f32.mrf.mxu1 }
 0x8c3   : > { %v1449_v4 = vpop.f32.mrf.mxu0 }
 0x8c4   : > { %v1484_v6 = vadd.f32 %v1483_v5, %v1449_v4 }
 0x8c8   : > { %v1485_v16 = vpop.f32.mrf.mxu1 }
 0x8ca   : > { %v1521_v8 = vpop.f32.mrf.mxu2 }
 0x8cb   : > { %v1526_v9 = vadd.f32 %v1521_v8, %v1484_v6  ;;  %v1451_v14 = vpop.f32.mrf.mxu0 }
 0x8cc   : > { %v1486_v19 = vadd.f32 %v1485_v16, %v1451_v14 }
 0x8cd   : > { %v1532_v11 = vadd.f32 %v1999_v7, %v1526_v9 }
 0x8cf   : > { %v1538_v15 = vmul.f32 %v2000_v10, %v1532_v11 }
 0x8d1   : > { %v1544_v18 = vadd.f32 %v2001_v13, %v1538_v15 }
 0x8d2   : > { %v1523_v20 = vpop.f32.mrf.mxu2 }
 0x8d3   : > { %v1548_v21 = vmin.f32 %v1544_v18, 0.0  ;;  %v1527_v22 = vadd.f32 %v1523_v20, %v1486_v19  ;;  %vm1546_vm9 = vcmp.gt.f32.partialorder %v1544_v18, 0.0 }
 0x8d5   : > { %v1550_v23 = vmul.f32 1.442695, %v1548_v21  ;;  %v1533_v24 = vadd.f32 %v1999_v7, %v1527_v22 }
 0x8d7   : > { %v1539_v25 = vmul.f32 %v2000_v10, %v1533_v24  ;;  %2044 = vpow2.f32 %v1550_v23 }
 0x8d9   : > { %v1545_v28 = vadd.f32 %v2001_v13, %v1539_v25 }
 0x8db   : > { %v1549_v29 = vmin.f32 %v1545_v28, 0.0  ;;  %vm1547_vm10 = vcmp.gt.f32.partialorder %v1545_v28, 0.0 }
 0x8dd   : > { %v1552_v30 = vmul.f32 1.442695, %v1549_v29  ;;  %v2045_v31 = vpop.eup %2044 }
 0x8de   : > { %v1865_v32 = vadd.f32 -1.0, %v2045_v31 }
 0x8df   : > { %2046 = vpow2.f32 %v1552_v30 }
 0x8e0   : > { %v1556_v34 = vsel %vm1546_vm9, %v1544_v18, %v1865_v32 }
 0x8e1   : > { %v1561_v36 = vrot.slane %v1556_v34, 7  ;;  %v1569_v17 = vrot.slane %v1556_v34, 1 }
 0x8e5   : > { %v2047_v33 = vpop.eup %2046 }
 0x8e6   : > { %v1866_v35 = vadd.f32 -1.0, %v2047_v33 }
 0x8e8   : > { %v1557_v26 = vsel %vm1547_vm10, %v1545_v28, %v1866_v35 }
 0x8e9   : > { %v1562_v12 = vrot.slane %v1557_v26, 7  ;;  %v1570_v27 = vrot.slane %v1557_v26, 1 }
 0x8eb   : > { %v1563_v37 = vsel %vm1400_vm7, %v1561_v36, %v1562_v12  ;;  %v1564_v38 = vsel %vm1400_vm7, %v1562_v12, %v1561_v36  ;;  %v1572_v39 = vsel %vm1407_vm8, %v1570_v27, %v1569_v17  ;;  %v1571_v45 = vsel %vm1407_vm8, %v1569_v17, %v1570_v27 }
 0x8ec   : > { %v1565_v40 = vsel %vm1559_vm11, -1e+30, %v1564_v38  ;;  %v1574_v42 = vsel %vm1568_vm12, -1e+30, %v1572_v39  ;;  %v1576_v43 = vmax.f32 %v1557_v26, %v1563_v37 }
 0x8ed   : > { %v1575_v44 = vmax.f32 %v1556_v34, %v1565_v40 }
 0x8ee   : > { %v1578_v46 = vmax.f32 %v1576_v43, %v1574_v42 }
 0x8ef   : > { %v1577_v47 = vmax.f32 %v1575_v44, %v1571_v45 }
 0x8f0   : > { %1580 = vst.msk [vmem:[#allocation3 + $0x8] sm:$0xff] %vm734_vm0, %v1578_v46 }
 0x8f1   : > { %1579 = vst.msk [vmem:[#allocation3] sm:$0xff] %vm734_vm0, %v1577_v47 }
 0x8f8   : > { %v1581_v48 = vld [vmem:[#allocation3] ss:$2 sm:$0xff] }
 0x8f9   : > { %v1582_v41 = vpack.c.bf16 %v1581_v48, %v1581_v48 }
 0x8fb   : > { %1584 = vst.msk [vmem:[%s693_s29] sm:$0xf] %vm1583_vm13, %v1582_v41 }
 0x8fc   : > { %2223 = shalt.err (!%p2220_p1)
}
 0x8fd   : > { %1910 = dma.vmem_to_hbm [thread:$0]  (%p2435_p5), %s1604_s13, 64, %s1606_s7, %s1586_s5  }
 0x8fe PF: > { %s2812_s19 = sld [smem:[#allocation22_spill]] }
 0x8ff   : > { %s2813_s1 = sld [smem:[#allocation20_spill]] }
 0x904   : > { %p1942_p2 = scmp.ge.s32.totalorder %s2812_s19, 2 }
 0x905   : > { %s1634_s26 = sand.u32 1, %s2813_s1  }
 0x906   : > { %p1928_p3 = pnand %p1942_p2, %p2439_p6  ;;  %s1635_s23 = scalar_lea.sflag [#allocation6], %s1634_s26 }
 0x908   : > { %p1929_p4 = pneg %p1928_p3 }
 0x90a   : > { %2253 = dma.done.wait (%p1929_p4), %s1635_s23, 64  }
 0x90b   : > { %2255 = vsyncadd (%p1929_p4), %s1635_s23, 4294967232  ;;  %s1645_s29 = scalar_lea.sflag [#allocation14], %s1634_s26 }
 0x90c   : > { %2257 = dma.done.wait (%p1929_p4), %s1645_s29, 512  }
 0x90d   : > { %2259 = vsyncadd (%p1929_p4), %s1645_s29, 4294966784  ;;  %s2815_s24 = sld [smem:[#allocation23_spill]]  ;;  %s2818_s1 = smov %s2266_s22 }
 0x90e   : > { %s2816_s18 = sld [smem:[#allocation21_spill]] }
 0x90f   : > { %s2817_s23 = sld [smem:[#allocation24_spill]] }
 0x913   : > { %p37_p5 = scmp.ge.s32.totalorder %s2815_s24, 4  }
 0x914   : > { %s2819_s22 = smov %s2816_s18 }
 0x915   :  { %39 = sbr.rel (!%p37_p5) target bundleno = 20 (0x14), region = 168 }
 0x91a   :  { %1651 = vsyncpa [#allocation5], 1 }
 0x91b   :  { %1653 = vsyncpa [#allocation5 + $0x1], 1 }
 0x91c   :  { %1654 = vsyncpa [#allocation8], 1 }
 0x91d   :  { %1655 = vsyncpa [#allocation11], 1 }
 0x91e   :  { %1656 = vsyncpa [#allocation6], 1 }
 0x91f   :  { %1658 = vsyncpa [#allocation6 + $0x1], 1 }
 0x920   :  { %1659 = vsyncpa [#allocation14], 1 }
 0x921   :  { %1661 = vsyncpa [#allocation14 + $0x1], 1 }

</bundles_post_ra>
